<compile_context>
chip_gen: v5e
topology: v5e:2x2
jax: 0.10.0
libtpu: 0.0.40
codegen_flags: <defaults>
</compile_context>

<pallas_src>
import functools

import jax
import jax.numpy as jnp
from jax.experimental import pallas as pl
from jax.experimental.pallas import tpu as pltpu


# ---------------------------------------------------------------------------
# Fused kernel: grid = (batch_blocks, 3 phases, lex/vocab tiles)
#   phase 0: accumulate docs @ w1 over lex tiles; on the last tile finalize
#            the encoder (h2, mu, sigma) and sample z = mu + sigma * eps.
#   phase 1: online (running max / running sum-exp) logsumexp over vocab tiles
#            for both decoder heads.
#   phase 2: recompute the cheap (B,bit)@(bit,tn) logits tiles and write the
#            normalized log-softmax as two lane-dense (B, tn) outputs.
# ---------------------------------------------------------------------------

def _nbrreg_kernel(docs_ref, w1_ref, b1_ref, w2_ref, b2_ref,
                   wmu_ref, bmu_ref, wsig_ref, bsig_ref, eps_ref,
                   wrec_ref, brec_ref, wnn_ref, bnn_ref,
                   mu_ref, sigma_ref, logp_ref, lognn_ref,
                   h1_acc, z_sc, m_doc, l_doc, m_nn, l_nn,
                   *, exp_dtype):
    p = pl.program_id(1)            # phase
    j = pl.program_id(2)            # lex / vocab tile index
    nj = pl.num_programs(2)

    # ---------------- phase 0: encoder (contract over lex tiles) -----------
    @pl.when(jnp.logical_and(p == 0, j == 0))
    def _init_acc():
        h1_acc[...] = jnp.zeros_like(h1_acc)

    @pl.when(p == 0)
    def _encode_accum():
        # docs arrive pre-cast to bf16 from the wrapper: no per-tile VPU cast.
        h1_acc[...] += jnp.dot(docs_ref[...], w1_ref[...],
                               preferred_element_type=jnp.float32)

    @pl.when(jnp.logical_and(p == 0, j == nj - 1))
    def _encode_finalize():
        h1 = jnp.maximum(h1_acc[...] + b1_ref[...], 0.0).astype(jnp.bfloat16)
        h2 = jnp.dot(h1, w2_ref[...],
                     preferred_element_type=jnp.float32) + b2_ref[...]
        h2 = jnp.maximum(h2, 0.0).astype(jnp.bfloat16)
        mu = jnp.dot(h2, wmu_ref[...],
                     preferred_element_type=jnp.float32) + bmu_ref[...]
        sigma = jax.nn.sigmoid(
            jnp.dot(h2, wsig_ref[...],
                    preferred_element_type=jnp.float32) + bsig_ref[...])
        mu_ref[...] = mu
        sigma_ref[...] = sigma
        # Reparameterized sample of Normal(mu, sigma).
        z_sc[...] = mu + sigma * eps_ref[...]
        # Init online-logsumexp state for both decoder heads.
        m_doc[...] = jnp.full_like(m_doc, -jnp.inf)
        m_nn[...] = jnp.full_like(m_nn, -jnp.inf)
        l_doc[...] = jnp.zeros_like(l_doc)
        l_nn[...] = jnp.zeros_like(l_nn)

    # ---------------- phase 1: online logsumexp over vocab tiles ------------
    @pl.when(p == 1)
    def _lse():
        z = z_sc[...].astype(jnp.bfloat16)
        ld = jnp.dot(z, wrec_ref[...],
                     preferred_element_type=jnp.float32) + brec_ref[...]
        ln = jnp.dot(z, wnn_ref[...],
                     preferred_element_type=jnp.float32) + bnn_ref[...]
        new_md = jnp.maximum(m_doc[...], jnp.max(ld, axis=-1, keepdims=True))
        new_mn = jnp.maximum(m_nn[...], jnp.max(ln, axis=-1, keepdims=True))
        # exp() in exp_dtype (bf16 on v6e/v7x ~doubles EUP throughput); the
        # running sums stay in f32 so accumulation error stays small.
        pd = jnp.exp((ld - new_md).astype(exp_dtype)).astype(jnp.float32)
        pn = jnp.exp((ln - new_mn).astype(exp_dtype)).astype(jnp.float32)
        l_doc[...] = (l_doc[...] * jnp.exp(m_doc[...] - new_md)
                      + jnp.sum(pd, axis=-1, keepdims=True))
        l_nn[...] = (l_nn[...] * jnp.exp(m_nn[...] - new_mn)
                     + jnp.sum(pn, axis=-1, keepdims=True))
        m_doc[...] = new_md
        m_nn[...] = new_mn

    # ---------------- phase 2: recompute logits, normalize, write -----------
    @pl.when(p == 2)
    def _normalize():
        z = z_sc[...].astype(jnp.bfloat16)
        ld = jnp.dot(z, wrec_ref[...],
                     preferred_element_type=jnp.float32) + brec_ref[...]
        ln = jnp.dot(z, wnn_ref[...],
                     preferred_element_type=jnp.float32) + bnn_ref[...]
        logp_ref[...] = ld - (m_doc[...] + jnp.log(l_doc[...]))
        lognn_ref[...] = ln - (m_nn[...] + jnp.log(l_nn[...]))


# ---------------------------------------------------------------------------
# Tiling defaults (generation-aware)
# ---------------------------------------------------------------------------

def _largest_tile(n, candidates):
    for c in candidates:
        if c <= n and n % c == 0:
            return c
    return n


def _vmem_capacity_bytes():
    try:
        return int(pltpu.get_tpu_info().vmem_capacity_bytes)
    except Exception:
        return 64 * 1024 * 1024   # conservative fallback (v7x-class per core)


def _default_tiles(B, lex):
    big_vmem = _vmem_capacity_bytes() >= 100 * 1024 * 1024   # v5e / v6e: 128 MiB
    if big_vmem:
        # Single TensorCore: minimize nb (weights are re-streamed nb times);
        # spend the big VMEM on larger lex tiles.
        block_b = B if B <= 512 else _largest_tile(B, (512, 256, 128, 64, 32, 16, 8))
        block_lex = lex if lex <= 128 else _largest_tile(lex, (2048, 1024, 512, 256, 128))
    else:
        # v7x-class: 2 TensorCores per chip, 64 MiB VMEM each -> aim for
        # exactly 2 batch blocks (one per core) with capped tiles.
        if B % 2 == 0 and (B // 2) % 8 == 0 and (B // 2) <= 256:
            block_b = B // 2
        else:
            block_b = B if B <= 256 else _largest_tile(B, (256, 128, 64, 32, 16, 8))
        block_lex = lex if lex <= 128 else _largest_tile(lex, (1024, 512, 256, 128))
    return block_b, block_lex


# ---------------------------------------------------------------------------
# Wrapper
# ---------------------------------------------------------------------------

def nbrreg_forward(docs, params, eps, *, block_b=None, block_lex=None,
                   vmem_limit_bytes=48 * 1024 * 1024, exp_in_bf16=True):
    """Returns ((mu, sigma), log_prob_words, log_nn_prob_words).

    (mu, sigma) parameterize the Normal posterior that PyTorch wraps in
    torch.distributions.Normal; rsample() is mu + sigma * eps with a
    standard-normal eps supplied by the caller.

    Tuning notes: vmem_limit_bytes=48 MiB is safe on every TPU generation;
    on v5e/v6e (128 MiB VMEM) it can be raised to ~100 MiB together with
    larger block_b/block_lex for fewer grid steps and longer DMAs.
    """
    B, lex = docs.shape
    h = params["w1"].shape[1]
    bit = params["wmu"].shape[1]
    assert params["w1"].shape[0] == lex

    if block_b is None or block_lex is None:
        auto_b, auto_lex = _default_tiles(B, lex)
        block_b = auto_b if block_b is None else block_b
        block_lex = auto_lex if block_lex is None else block_lex

    assert B % block_b == 0 and lex % block_lex == 0, (B, lex, block_b, block_lex)
    assert block_b == B or block_b % 8 == 0, "block_b must be a multiple of 8"
    assert block_lex == lex or block_lex % 128 == 0, "block_lex must be a multiple of 128"

    nb = B // block_b
    nt = lex // block_lex
    tn = block_lex
    last = nt - 1

    # docs in bf16: halves docs HBM read + VMEM tile footprint. (In production
    # the caller should hand in bf16 docs directly so this cast fuses upstream.)
    docs_bf16 = docs if docs.dtype == jnp.bfloat16 else docs.astype(jnp.bfloat16)

    # --- index maps (b = batch block, p = phase, j = lex/vocab tile) --------
    def docs_map(b, p, j):
        # Sticky park on the LAST lex tile once phase 0 is done: no useless
        # re-DMA of a docs tile at the phase-0 -> phase-1 transition.
        return (b, jnp.where(p == 0, j, last))

    def w1_map(b, p, j):
        return (jnp.where(p == 0, j, last), 0)

    def dec_map(b, p, j):
        # Parked on tile 0 during the encode phase (phase 1 starts there).
        return (0, jnp.where(p == 0, 0, j))

    def out_vocab_map(b, p, j):
        # Parked on tile 0 (written first in phase 2) during phases 0/1.
        return (b, jnp.where(p == 2, j, 0))

    const_map = lambda b, p, j: (0, 0)
    batch_map = lambda b, p, j: (b, 0)

    in_specs = [
        pl.BlockSpec((block_b, tn), docs_map),          # docs (bf16)
        pl.BlockSpec((tn, h), w1_map),                  # w1   (bf16)
        pl.BlockSpec((1, h), const_map),                # b1
        pl.BlockSpec((h, h), const_map),                # w2   (bf16)
        pl.BlockSpec((1, h), const_map),                # b2
        pl.BlockSpec((h, bit), const_map),              # wmu  (bf16)
        pl.BlockSpec((1, bit), const_map),              # bmu
        pl.BlockSpec((h, bit), const_map),              # wsig (bf16)
        pl.BlockSpec((1, bit), const_map),              # bsig
        pl.BlockSpec((block_b, bit), batch_map),        # eps
        pl.BlockSpec((bit, tn), dec_map),               # wrec (bf16)
        pl.BlockSpec((1, tn), dec_map),                 # brec
        pl.BlockSpec((bit, tn), dec_map),               # wnn  (bf16)
        pl.BlockSpec((1, tn), dec_map),                 # bnn
    ]
    out_specs = (
        pl.BlockSpec((block_b, bit), batch_map),        # mu
        pl.BlockSpec((block_b, bit), batch_map),        # sigma
        pl.BlockSpec((block_b, tn), out_vocab_map),     # log_prob_words
        pl.BlockSpec((block_b, tn), out_vocab_map),     # log_nn_prob_words
    )
    out_shapes = (
        jax.ShapeDtypeStruct((B, bit), jnp.float32),
        jax.ShapeDtypeStruct((B, bit), jnp.float32),
        jax.ShapeDtypeStruct((B, lex), jnp.float32),
        jax.ShapeDtypeStruct((B, lex), jnp.float32),
    )
    scratch_shapes = [
        pltpu.VMEM((block_b, h), jnp.float32),    # h1 accumulator
        pltpu.VMEM((block_b, bit), jnp.float32),  # z (latent sample)
        pltpu.VMEM((block_b, 1), jnp.float32),    # running max    (doc head)
        pltpu.VMEM((block_b, 1), jnp.float32),    # running sumexp (doc head)
        pltpu.VMEM((block_b, 1), jnp.float32),    # running max    (nn head)
        pltpu.VMEM((block_b, 1), jnp.float32),    # running sumexp (nn head)
    ]

    kernel = functools.partial(
        _nbrreg_kernel,
        exp_dtype=jnp.bfloat16 if exp_in_bf16 else jnp.float32)

    mu, sigma, log_prob_words, log_nn_prob_words = pl.pallas_call(
        kernel,
        out_shape=out_shapes,
        grid_spec=pltpu.PrefetchScalarGridSpec(
            num_scalar_prefetch=0,
            grid=(nb, 3, nt),
            in_specs=in_specs,
            out_specs=out_specs,
            scratch_shapes=scratch_shapes),
        compiler_params=pltpu.CompilerParams(
            dimension_semantics=("parallel", "arbitrary", "arbitrary"),
            vmem_limit_bytes=vmem_limit_bytes),
    )(docs_bf16,
      params["w1"], params["b1"], params["w2"], params["b2"],
      params["wmu"], params["bmu"], params["wsig"], params["bsig"],
      eps,
      params["wrec"], params["brec"], params["wnn"], params["bnn"])

    return (mu, sigma), log_prob_words, log_nn_prob_words


# ---------------------------------------------------------------------------
# Parameters (torch.nn.Linear-style init; weights stored transposed and bf16)
# ---------------------------------------------------------------------------

def _linear_params(key, in_dim, out_dim, w_dtype):
    kw, kb = jax.random.split(key)
    bound = float(in_dim) ** -0.5
    w = jax.random.uniform(kw, (in_dim, out_dim), jnp.float32, -bound, bound)
    b = jax.random.uniform(kb, (1, out_dim), jnp.float32, -bound, bound)
    return w.astype(w_dtype), b


def make_params(key, lex_size, bit_size, h_size, w_dtype=jnp.bfloat16):
    keys = jax.random.split(key, 6)
    w1, b1 = _linear_params(keys[0], lex_size, h_size, w_dtype)        # lnr_h1
    w2, b2 = _linear_params(keys[1], h_size, h_size, w_dtype)          # lnr_h2
    wmu, bmu = _linear_params(keys[2], h_size, bit_size, w_dtype)      # lnr_mu
    wsig, bsig = _linear_params(keys[3], h_size, bit_size, w_dtype)    # lnr_sigma
    wrec, brec = _linear_params(keys[4], bit_size, lex_size, w_dtype)  # lnr_rec_doc
    wnn, bnn = _linear_params(keys[5], bit_size, lex_size, w_dtype)    # lnr_nn_rec_doc
    return dict(w1=w1, b1=b1, w2=w2, b2=b2,
                wmu=wmu, bmu=bmu, wsig=wsig, bsig=bsig,
                wrec=wrec, brec=brec, wnn=wnn, bnn=bnn)


# ---------------------------------------------------------------------------
# Pure-JAX reference (same bf16 weight quantization, f32 accumulation)
# ---------------------------------------------------------------------------

def nbrreg_reference(docs, params, eps):
    def dot(x, w):
        return jnp.dot(x.astype(jnp.bfloat16), w.astype(jnp.bfloat16),
                       preferred_element_type=jnp.float32)
    h1 = jnp.maximum(dot(docs, params["w1"]) + params["b1"], 0.0)
    h2 = jnp.maximum(dot(h1, params["w2"]) + params["b2"], 0.0)
    mu = dot(h2, params["wmu"]) + params["bmu"]
    sigma = jax.nn.sigmoid(dot(h2, params["wsig"]) + params["bsig"])
    z = mu + sigma * eps
    logits_doc = dot(z, params["wrec"]) + params["brec"]
    logits_nn = dot(z, params["wnn"]) + params["bnn"]
    return ((mu, sigma),
            jax.nn.log_softmax(logits_doc, axis=1),
            jax.nn.log_softmax(logits_nn, axis=1))


# ---------------------------------------------------------------------------
# Main
# ---------------------------------------------------------------------------

if __name__ == "__main__":
    # Small demo shapes consistent with the module (docs are (batch, lex) BoW).
    batch = 16
    lex_size = 256
    bit_size = 32
    h_size = 128

    root = jax.random.PRNGKey(0)
    k_params, k_docs, k_eps = jax.random.split(root, 3)

    params = make_params(k_params, lex_size, bit_size, h_size)
    docs = jax.random.uniform(k_docs, (batch, lex_size), jnp.float32)
    eps = jax.random.normal(k_eps, (batch, bit_size), jnp.float32)

    # block_b=8 / block_lex=128 exercise both the batch grid axis and the
    # lex/vocab tiling (grid = (2, 3, 2)) even at demo shapes.
    fwd = jax.jit(functools.partial(nbrreg_forward, block_b=8, block_lex=128))
    (mu, sigma), log_prob_words, log_nn_prob_words = fwd(docs, params, eps)
    jax.block_until_ready((mu, sigma, log_prob_words, log_nn_prob_words))

    # Structural checks.
    assert mu.shape == (batch, bit_size)
    assert sigma.shape == (batch, bit_size)
    assert log_prob_words.shape == (batch, lex_size)
    assert log_nn_prob_words.shape == (batch, lex_size)
    assert bool(jnp.all(jnp.isfinite(log_prob_words)))
    assert bool(jnp.all(jnp.isfinite(log_nn_prob_words)))
    # bf16 exp in the online logsumexp bounds the softmax-normalization error
    # to well under 1e-2.
    assert bool(jnp.allclose(jnp.sum(jnp.exp(log_prob_words), axis=1), 1.0, atol=1e-2))
    assert bool(jnp.allclose(jnp.sum(jnp.exp(log_nn_prob_words), axis=1), 1.0, atol=1e-2))

    # Numerical check against the pure-JAX reference.
    (mu_r, sigma_r), logp_r, lognn_r = nbrreg_reference(docs, params, eps)
    for got, ref in ((mu, mu_r), (sigma, sigma_r),
                     (log_prob_words, logp_r), (log_nn_prob_words, lognn_r)):
        err = float(jnp.max(jnp.abs(got - ref)))
        assert bool(jnp.allclose(got, ref, rtol=2e-2, atol=2e-2)), err

    print("KERNEL_OK")
</pallas_src>

<mosaic_0001>
module attributes {stable_mosaic.version = 11 : i64} {
  func.func @_nbrreg_kernel(%arg0: i32, %arg1: i32, %arg2: i32, %arg3: memref<8x128xbf16, #tpu.memory_space<vmem>>, %arg4: memref<128x128xbf16, #tpu.memory_space<vmem>>, %arg5: memref<1x128xf32, #tpu.memory_space<vmem>>, %arg6: memref<128x128xbf16, #tpu.memory_space<vmem>>, %arg7: memref<1x128xf32, #tpu.memory_space<vmem>>, %arg8: memref<128x32xbf16, #tpu.memory_space<vmem>>, %arg9: memref<1x32xf32, #tpu.memory_space<vmem>>, %arg10: memref<128x32xbf16, #tpu.memory_space<vmem>>, %arg11: memref<1x32xf32, #tpu.memory_space<vmem>>, %arg12: memref<8x32xf32, #tpu.memory_space<vmem>>, %arg13: memref<32x128xbf16, #tpu.memory_space<vmem>>, %arg14: memref<1x128xf32, #tpu.memory_space<vmem>>, %arg15: memref<32x128xbf16, #tpu.memory_space<vmem>>, %arg16: memref<1x128xf32, #tpu.memory_space<vmem>>, %arg17: memref<8x32xf32, #tpu.memory_space<vmem>>, %arg18: memref<8x32xf32, #tpu.memory_space<vmem>>, %arg19: memref<8x128xf32, #tpu.memory_space<vmem>>, %arg20: memref<8x128xf32, #tpu.memory_space<vmem>>, %arg21: memref<8x128xf32, #tpu.memory_space<vmem>>, %arg22: memref<8x32xf32, #tpu.memory_space<vmem>>, %arg23: memref<8x1xf32, #tpu.memory_space<vmem>>, %arg24: memref<8x1xf32, #tpu.memory_space<vmem>>, %arg25: memref<8x1xf32, #tpu.memory_space<vmem>>, %arg26: memref<8x1xf32, #tpu.memory_space<vmem>>) attributes {dimension_semantics = [#tpu.dimension_semantics<parallel>, #tpu.dimension_semantics<arbitrary>, #tpu.dimension_semantics<arbitrary>], iteration_bounds = array<i64: 2, 3, 2>, scalar_prefetch = 0 : i64, scratch_operands = 6 : i64, tpu.core_type = #tpu.core_type<tc>, window_params = [{transform_indices = @transform_0, window_bounds = array<i64: 8, 128>}, {transform_indices = @transform_1, window_bounds = array<i64: 128, 128>}, {pipeline_mode = #tpu.pipeline_mode<synchronous>, transform_indices = @transform_2, window_bounds = array<i64: 1, 128>}, {pipeline_mode = #tpu.pipeline_mode<synchronous>, transform_indices = @transform_3, window_bounds = array<i64: 128, 128>}, {pipeline_mode = #tpu.pipeline_mode<synchronous>, transform_indices = @transform_4, window_bounds = array<i64: 1, 128>}, {pipeline_mode = #tpu.pipeline_mode<synchronous>, transform_indices = @transform_5, window_bounds = array<i64: 128, 32>}, {pipeline_mode = #tpu.pipeline_mode<synchronous>, transform_indices = @transform_6, window_bounds = array<i64: 1, 32>}, {pipeline_mode = #tpu.pipeline_mode<synchronous>, transform_indices = @transform_7, window_bounds = array<i64: 128, 32>}, {pipeline_mode = #tpu.pipeline_mode<synchronous>, transform_indices = @transform_8, window_bounds = array<i64: 1, 32>}, {transform_indices = @transform_9, window_bounds = array<i64: 8, 32>}, {transform_indices = @transform_10, window_bounds = array<i64: 32, 128>}, {transform_indices = @transform_11, window_bounds = array<i64: 1, 128>}, {transform_indices = @transform_12, window_bounds = array<i64: 32, 128>}, {transform_indices = @transform_13, window_bounds = array<i64: 1, 128>}, {transform_indices = @transform_14, window_bounds = array<i64: 8, 32>}, {transform_indices = @transform_15, window_bounds = array<i64: 8, 32>}, {transform_indices = @transform_16, window_bounds = array<i64: 8, 128>}, {transform_indices = @transform_17, window_bounds = array<i64: 8, 128>}]} {
    %c0_i32 = arith.constant 0 : i32
    %0 = arith.cmpi eq, %arg1, %c0_i32 : i32
    %c0_i32_0 = arith.constant 0 : i32
    %1 = arith.cmpi eq, %arg2, %c0_i32_0 : i32
    %2 = arith.andi %0, %1 : i1
    %3 = arith.extui %2 : i1 to i32
    %c0_i32_1 = arith.constant 0 : i32
    %4 = arith.cmpi ne, %3, %c0_i32_1 : i32
    scf.if %4 {
      %cst = arith.constant 0.000000e+00 : f32
      %19 = vector.broadcast %cst : f32 to vector<8x128xf32>
      %c0 = arith.constant 0 : index
      %c0_9 = arith.constant 0 : index
      %20 = vector.load %arg21[%c0, %c0_9] : memref<8x128xf32, #tpu.memory_space<vmem>>, vector<8x128xf32>
      tpu.vector_store %arg21[%c0, %c0_9], %19 {strides = array<i32>} : memref<8x128xf32, #tpu.memory_space<vmem>>, vector<8x128xf32>,
    } else {
    }
    %c0_i32_2 = arith.constant 0 : i32
    %5 = arith.cmpi eq, %arg1, %c0_i32_2 : i32
    %6 = arith.extui %5 : i1 to i32
    %c0_i32_3 = arith.constant 0 : i32
    %7 = arith.cmpi ne, %6, %c0_i32_3 : i32
    scf.if %7 {
      %c0 = arith.constant 0 : index
      %c0_9 = arith.constant 0 : index
      %19 = vector.load %arg21[%c0, %c0_9] : memref<8x128xf32, #tpu.memory_space<vmem>>, vector<8x128xf32>
      %c0_10 = arith.constant 0 : index
      %c0_11 = arith.constant 0 : index
      %20 = vector.load %arg3[%c0_10, %c0_11] : memref<8x128xbf16, #tpu.memory_space<vmem>>, vector<8x128xbf16>
      %c0_12 = arith.constant 0 : index
      %c0_13 = arith.constant 0 : index
      %21 = vector.load %arg4[%c0_12, %c0_13] : memref<128x128xbf16, #tpu.memory_space<vmem>>, vector<128x128xbf16>
      %cst = arith.constant dense<0.000000e+00> : vector<8x128xf32>
      %22 = tpu.matmul %20, %21, %cst {dimension_numbers = #tpu.dot_dimension_numbers<[1], [0], [0], [1], [0, 0, 1, 1], [], []>} : vector<8x128xbf16>, vector<128x128xbf16>, vector<8x128xf32> -> vector<8x128xf32>
      %23 = arith.addf %19, %22 : vector<8x128xf32>
      %c0_14 = arith.constant 0 : index
      %c0_15 = arith.constant 0 : index
      %24 = vector.load %arg21[%c0_14, %c0_15] : memref<8x128xf32, #tpu.memory_space<vmem>>, vector<8x128xf32>
      tpu.vector_store %arg21[%c0_14, %c0_15], %23 {strides = array<i32>} : memref<8x128xf32, #tpu.memory_space<vmem>>, vector<8x128xf32>,
    } else {
    }
    %c0_i32_4 = arith.constant 0 : i32
    %8 = arith.cmpi eq, %arg1, %c0_i32_4 : i32
    %c1_i32 = arith.constant 1 : i32
    %9 = arith.cmpi eq, %arg2, %c1_i32 : i32
    %10 = arith.andi %8, %9 : i1
    %11 = arith.extui %10 : i1 to i32
    %c0_i32_5 = arith.constant 0 : i32
    %12 = arith.cmpi ne, %11, %c0_i32_5 : i32
    scf.if %12 {
      %c0 = arith.constant 0 : index
      %c0_9 = arith.constant 0 : index
      %19 = vector.load %arg21[%c0, %c0_9] : memref<8x128xf32, #tpu.memory_space<vmem>>, vector<8x128xf32>
      %c0_10 = arith.constant 0 : index
      %c0_11 = arith.constant 0 : index
      %20 = vector.load %arg5[%c0_10, %c0_11] : memref<1x128xf32, #tpu.memory_space<vmem>>, vector<1x128xf32>
      %21 = vector.broadcast %20 : vector<1x128xf32> to vector<8x128xf32>
      %22 = arith.addf %19, %21 : vector<8x128xf32>
      %cst = arith.constant 0.000000e+00 : f32
      %23 = vector.broadcast %cst : f32 to vector<8x128xf32>
      %24 = arith.maximumf %22, %23 : vector<8x128xf32>
      %25 = arith.truncf %24 : vector<8x128xf32> to vector<8x128xbf16>
      %c0_12 = arith.constant 0 : index
      %c0_13 = arith.constant 0 : index
      %26 = vector.load %arg6[%c0_12, %c0_13] : memref<128x128xbf16, #tpu.memory_space<vmem>>, vector<128x128xbf16>
      %cst_14 = arith.constant dense<0.000000e+00> : vector<8x128xf32>
      %27 = tpu.matmul %25, %26, %cst_14 {dimension_numbers = #tpu.dot_dimension_numbers<[1], [0], [0], [1], [0, 0, 1, 1], [], []>} : vector<8x128xbf16>, vector<128x128xbf16>, vector<8x128xf32> -> vector<8x128xf32>
      %c0_15 = arith.constant 0 : index
      %c0_16 = arith.constant 0 : index
      %28 = vector.load %arg7[%c0_15, %c0_16] : memref<1x128xf32, #tpu.memory_space<vmem>>, vector<1x128xf32>
      %29 = vector.broadcast %28 : vector<1x128xf32> to vector<8x128xf32>
      %30 = arith.addf %27, %29 : vector<8x128xf32>
      %cst_17 = arith.constant 0.000000e+00 : f32
      %31 = vector.broadcast %cst_17 : f32 to vector<8x128xf32>
      %32 = arith.maximumf %30, %31 : vector<8x128xf32>
      %33 = arith.truncf %32 : vector<8x128xf32> to vector<8x128xbf16>
      %c0_18 = arith.constant 0 : index
      %c0_19 = arith.constant 0 : index
      %34 = vector.load %arg8[%c0_18, %c0_19] : memref<128x32xbf16, #tpu.memory_space<vmem>>, vector<128x32xbf16>
      %cst_20 = arith.constant dense<0.000000e+00> : vector<8x32xf32>
      %35 = tpu.matmul %33, %34, %cst_20 {dimension_numbers = #tpu.dot_dimension_numbers<[1], [0], [0], [1], [0, 0, 1, 1], [], []>} : vector<8x128xbf16>, vector<128x32xbf16>, vector<8x32xf32> -> vector<8x32xf32>
      %c0_21 = arith.constant 0 : index
      %c0_22 = arith.constant 0 : index
      %36 = vector.load %arg9[%c0_21, %c0_22] : memref<1x32xf32, #tpu.memory_space<vmem>>, vector<1x32xf32>
      %37 = vector.broadcast %36 : vector<1x32xf32> to vector<8x32xf32>
      %38 = arith.addf %35, %37 : vector<8x32xf32>
      %c0_23 = arith.constant 0 : index
      %c0_24 = arith.constant 0 : index
      %39 = vector.load %arg10[%c0_23, %c0_24] : memref<128x32xbf16, #tpu.memory_space<vmem>>, vector<128x32xbf16>
      %cst_25 = arith.constant dense<0.000000e+00> : vector<8x32xf32>
      %40 = tpu.matmul %33, %39, %cst_25 {dimension_numbers = #tpu.dot_dimension_numbers<[1], [0], [0], [1], [0, 0, 1, 1], [], []>} : vector<8x128xbf16>, vector<128x32xbf16>, vector<8x32xf32> -> vector<8x32xf32>
      %c0_26 = arith.constant 0 : index
      %c0_27 = arith.constant 0 : index
      %41 = vector.load %arg11[%c0_26, %c0_27] : memref<1x32xf32, #tpu.memory_space<vmem>>, vector<1x32xf32>
      %42 = vector.broadcast %41 : vector<1x32xf32> to vector<8x32xf32>
      %43 = arith.addf %40, %42 : vector<8x32xf32>
      %44 = arith.negf %43 : vector<8x32xf32>
      %45 = math.exp %44 : vector<8x32xf32>
      %cst_28 = arith.constant 1.000000e+00 : f32
      %46 = vector.broadcast %cst_28 : f32 to vector<8x32xf32>
      %47 = arith.addf %46, %45 : vector<8x32xf32>
      %48 = arith.divf %46, %47 : vector<8x32xf32>
      %c0_29 = arith.constant 0 : index
      %c0_30 = arith.constant 0 : index
      %49 = vector.load %arg17[%c0_29, %c0_30] : memref<8x32xf32, #tpu.memory_space<vmem>>, vector<8x32xf32>
      tpu.vector_store %arg17[%c0_29, %c0_30], %38 {strides = array<i32>} : memref<8x32xf32, #tpu.memory_space<vmem>>, vector<8x32xf32>,
      %c0_31 = arith.constant 0 : index
      %c0_32 = arith.constant 0 : index
      %50 = vector.load %arg18[%c0_31, %c0_32] : memref<8x32xf32, #tpu.memory_space<vmem>>, vector<8x32xf32>
      tpu.vector_store %arg18[%c0_31, %c0_32], %48 {strides = array<i32>} : memref<8x32xf32, #tpu.memory_space<vmem>>, vector<8x32xf32>,
      %c0_33 = arith.constant 0 : index
      %c0_34 = arith.constant 0 : index
      %51 = vector.load %arg12[%c0_33, %c0_34] : memref<8x32xf32, #tpu.memory_space<vmem>>, vector<8x32xf32>
      %52 = arith.mulf %48, %51 : vector<8x32xf32>
      %53 = arith.addf %38, %52 : vector<8x32xf32>
      %c0_35 = arith.constant 0 : index
      %c0_36 = arith.constant 0 : index
      %54 = vector.load %arg22[%c0_35, %c0_36] : memref<8x32xf32, #tpu.memory_space<vmem>>, vector<8x32xf32>
      tpu.vector_store %arg22[%c0_35, %c0_36], %53 {strides = array<i32>} : memref<8x32xf32, #tpu.memory_space<vmem>>, vector<8x32xf32>,
      %cst_37 = arith.constant 0xFF800000 : f32
      %55 = vector.broadcast %cst_37 : f32 to vector<8x1xf32>
      %c0_38 = arith.constant 0 : index
      %c0_39 = arith.constant 0 : index
      %56 = vector.load %arg23[%c0_38, %c0_39] : memref<8x1xf32, #tpu.memory_space<vmem>>, vector<8x1xf32>
      tpu.vector_store %arg23[%c0_38, %c0_39], %55 {strides = array<i32>} : memref<8x1xf32, #tpu.memory_space<vmem>>, vector<8x1xf32>,
      %cst_40 = arith.constant 0xFF800000 : f32
      %57 = vector.broadcast %cst_40 : f32 to vector<8x1xf32>
      %c0_41 = arith.constant 0 : index
      %c0_42 = arith.constant 0 : index
      %58 = vector.load %arg25[%c0_41, %c0_42] : memref<8x1xf32, #tpu.memory_space<vmem>>, vector<8x1xf32>
      tpu.vector_store %arg25[%c0_41, %c0_42], %57 {strides = array<i32>} : memref<8x1xf32, #tpu.memory_space<vmem>>, vector<8x1xf32>,
      %cst_43 = arith.constant 0.000000e+00 : f32
      %59 = vector.broadcast %cst_43 : f32 to vector<8x1xf32>
      %c0_44 = arith.constant 0 : index
      %c0_45 = arith.constant 0 : index
      %60 = vector.load %arg24[%c0_44, %c0_45] : memref<8x1xf32, #tpu.memory_space<vmem>>, vector<8x1xf32>
      tpu.vector_store %arg24[%c0_44, %c0_45], %59 {strides = array<i32>} : memref<8x1xf32, #tpu.memory_space<vmem>>, vector<8x1xf32>,
      %cst_46 = arith.constant 0.000000e+00 : f32
      %61 = vector.broadcast %cst_46 : f32 to vector<8x1xf32>
      %c0_47 = arith.constant 0 : index
      %c0_48 = arith.constant 0 : index
      %62 = vector.load %arg26[%c0_47, %c0_48] : memref<8x1xf32, #tpu.memory_space<vmem>>, vector<8x1xf32>
      tpu.vector_store %arg26[%c0_47, %c0_48], %61 {strides = array<i32>} : memref<8x1xf32, #tpu.memory_space<vmem>>, vector<8x1xf32>,
    } else {
    }
    %c1_i32_6 = arith.constant 1 : i32
    %13 = arith.cmpi eq, %arg1, %c1_i32_6 : i32
    %14 = arith.extui %13 : i1 to i32
    %c0_i32_7 = arith.constant 0 : i32
    %15 = arith.cmpi ne, %14, %c0_i32_7 : i32
    scf.if %15 {
      %c0 = arith.constant 0 : index
      %c0_9 = arith.constant 0 : index
      %19 = vector.load %arg22[%c0, %c0_9] : memref<8x32xf32, #tpu.memory_space<vmem>>, vector<8x32xf32>
      %20 = arith.truncf %19 : vector<8x32xf32> to vector<8x32xbf16>
      %c0_10 = arith.constant 0 : index
      %c0_11 = arith.constant 0 : index
      %21 = vector.load %arg13[%c0_10, %c0_11] : memref<32x128xbf16, #tpu.memory_space<vmem>>, vector<32x128xbf16>
      %cst = arith.constant dense<0.000000e+00> : vector<8x128xf32>
      %22 = tpu.matmul %20, %21, %cst {dimension_numbers = #tpu.dot_dimension_numbers<[1], [0], [0], [1], [0, 0, 1, 1], [], []>} : vector<8x32xbf16>, vector<32x128xbf16>, vector<8x128xf32> -> vector<8x128xf32>
      %c0_12 = arith.constant 0 : index
      %c0_13 = arith.constant 0 : index
      %23 = vector.load %arg14[%c0_12, %c0_13] : memref<1x128xf32, #tpu.memory_space<vmem>>, vector<1x128xf32>
      %24 = vector.broadcast %23 : vector<1x128xf32> to vector<8x128xf32>
      %25 = arith.addf %22, %24 : vector<8x128xf32>
      %c0_14 = arith.constant 0 : index
      %c0_15 = arith.constant 0 : index
      %26 = vector.load %arg15[%c0_14, %c0_15] : memref<32x128xbf16, #tpu.memory_space<vmem>>, vector<32x128xbf16>
      %cst_16 = arith.constant dense<0.000000e+00> : vector<8x128xf32>
      %27 = tpu.matmul %20, %26, %cst_16 {dimension_numbers = #tpu.dot_dimension_numbers<[1], [0], [0], [1], [0, 0, 1, 1], [], []>} : vector<8x32xbf16>, vector<32x128xbf16>, vector<8x128xf32> -> vector<8x128xf32>
      %c0_17 = arith.constant 0 : index
      %c0_18 = arith.constant 0 : index
      %28 = vector.load %arg16[%c0_17, %c0_18] : memref<1x128xf32, #tpu.memory_space<vmem>>, vector<1x128xf32>
      %29 = vector.broadcast %28 : vector<1x128xf32> to vector<8x128xf32>
      %30 = arith.addf %27, %29 : vector<8x128xf32>
      %c0_19 = arith.constant 0 : index
      %c0_20 = arith.constant 0 : index
      %31 = vector.load %arg23[%c0_19, %c0_20] : memref<8x1xf32, #tpu.memory_space<vmem>>, vector<8x1xf32>
      %cst_21 = arith.constant dense<0xFF800000> : vector<8xf32>
      %32 = vector.multi_reduction <maximumf>, %25, %cst_21 [1] : vector<8x128xf32> to vector<8xf32>
      %33 = vector.shape_cast %32 : vector<8xf32> to vector<8x1xf32>
      %34 = arith.maximumf %31, %33 : vector<8x1xf32>
      %c0_22 = arith.constant 0 : index
      %c0_23 = arith.constant 0 : index
      %35 = vector.load %arg25[%c0_22, %c0_23] : memref<8x1xf32, #tpu.memory_space<vmem>>, vector<8x1xf32>
      %cst_24 = arith.constant dense<0xFF800000> : vector<8xf32>
      %36 = vector.multi_reduction <maximumf>, %30, %cst_24 [1] : vector<8x128xf32> to vector<8xf32>
      %37 = vector.shape_cast %36 : vector<8xf32> to vector<8x1xf32>
      %38 = arith.maximumf %35, %37 : vector<8x1xf32>
      %39 = vector.broadcast %34 : vector<8x1xf32> to vector<8x128xf32>
      %40 = arith.subf %25, %39 : vector<8x128xf32>
      %41 = arith.truncf %40 : vector<8x128xf32> to vector<8x128xbf16>
      %42 = math.exp %41 : vector<8x128xbf16>
      %43 = arith.extf %42 : vector<8x128xbf16> to vector<8x128xf32>
      %44 = vector.broadcast %38 : vector<8x1xf32> to vector<8x128xf32>
      %45 = arith.subf %30, %44 : vector<8x128xf32>
      %46 = arith.truncf %45 : vector<8x128xf32> to vector<8x128xbf16>
      %47 = math.exp %46 : vector<8x128xbf16>
      %48 = arith.extf %47 : vector<8x128xbf16> to vector<8x128xf32>
      %c0_25 = arith.constant 0 : index
      %c0_26 = arith.constant 0 : index
      %49 = vector.load %arg24[%c0_25, %c0_26] : memref<8x1xf32, #tpu.memory_space<vmem>>, vector<8x1xf32>
      %c0_27 = arith.constant 0 : index
      %c0_28 = arith.constant 0 : index
      %50 = vector.load %arg23[%c0_27, %c0_28] : memref<8x1xf32, #tpu.memory_space<vmem>>, vector<8x1xf32>
      %51 = arith.subf %50, %34 : vector<8x1xf32>
      %52 = math.exp %51 : vector<8x1xf32>
      %53 = arith.mulf %49, %52 : vector<8x1xf32>
      %cst_29 = arith.constant dense<0.000000e+00> : vector<8xf32>
      %54 = vector.multi_reduction <add>, %43, %cst_29 [1] : vector<8x128xf32> to vector<8xf32>
      %55 = vector.shape_cast %54 : vector<8xf32> to vector<8x1xf32>
      %56 = arith.addf %53, %55 : vector<8x1xf32>
      %c0_30 = arith.constant 0 : index
      %c0_31 = arith.constant 0 : index
      %57 = vector.load %arg24[%c0_30, %c0_31] : memref<8x1xf32, #tpu.memory_space<vmem>>, vector<8x1xf32>
      tpu.vector_store %arg24[%c0_30, %c0_31], %56 {strides = array<i32>} : memref<8x1xf32, #tpu.memory_space<vmem>>, vector<8x1xf32>,
      %c0_32 = arith.constant 0 : index
      %c0_33 = arith.constant 0 : index
      %58 = vector.load %arg26[%c0_32, %c0_33] : memref<8x1xf32, #tpu.memory_space<vmem>>, vector<8x1xf32>
      %c0_34 = arith.constant 0 : index
      %c0_35 = arith.constant 0 : index
      %59 = vector.load %arg25[%c0_34, %c0_35] : memref<8x1xf32, #tpu.memory_space<vmem>>, vector<8x1xf32>
      %60 = arith.subf %59, %38 : vector<8x1xf32>
      %61 = math.exp %60 : vector<8x1xf32>
      %62 = arith.mulf %58, %61 : vector<8x1xf32>
      %cst_36 = arith.constant dense<0.000000e+00> : vector<8xf32>
      %63 = vector.multi_reduction <add>, %48, %cst_36 [1] : vector<8x128xf32> to vector<8xf32>
      %64 = vector.shape_cast %63 : vector<8xf32> to vector<8x1xf32>
      %65 = arith.addf %62, %64 : vector<8x1xf32>
      %c0_37 = arith.constant 0 : index
      %c0_38 = arith.constant 0 : index
      %66 = vector.load %arg26[%c0_37, %c0_38] : memref<8x1xf32, #tpu.memory_space<vmem>>, vector<8x1xf32>
      tpu.vector_store %arg26[%c0_37, %c0_38], %65 {strides = array<i32>} : memref<8x1xf32, #tpu.memory_space<vmem>>, vector<8x1xf32>,
      %c0_39 = arith.constant 0 : index
      %c0_40 = arith.constant 0 : index
      %67 = vector.load %arg23[%c0_39, %c0_40] : memref<8x1xf32, #tpu.memory_space<vmem>>, vector<8x1xf32>
      tpu.vector_store %arg23[%c0_39, %c0_40], %34 {strides = array<i32>} : memref<8x1xf32, #tpu.memory_space<vmem>>, vector<8x1xf32>,
      %c0_41 = arith.constant 0 : index
      %c0_42 = arith.constant 0 : index
      %68 = vector.load %arg25[%c0_41, %c0_42] : memref<8x1xf32, #tpu.memory_space<vmem>>, vector<8x1xf32>
      tpu.vector_store %arg25[%c0_41, %c0_42], %38 {strides = array<i32>} : memref<8x1xf32, #tpu.memory_space<vmem>>, vector<8x1xf32>,
    } else {
    }
    %c2_i32 = arith.constant 2 : i32
    %16 = arith.cmpi eq, %arg1, %c2_i32 : i32
    %17 = arith.extui %16 : i1 to i32
    %c0_i32_8 = arith.constant 0 : i32
    %18 = arith.cmpi ne, %17, %c0_i32_8 : i32
    scf.if %18 {
      %c0 = arith.constant 0 : index
      %c0_9 = arith.constant 0 : index
      %19 = vector.load %arg22[%c0, %c0_9] : memref<8x32xf32, #tpu.memory_space<vmem>>, vector<8x32xf32>
      %20 = arith.truncf %19 : vector<8x32xf32> to vector<8x32xbf16>
      %c0_10 = arith.constant 0 : index
      %c0_11 = arith.constant 0 : index
      %21 = vector.load %arg13[%c0_10, %c0_11] : memref<32x128xbf16, #tpu.memory_space<vmem>>, vector<32x128xbf16>
      %cst = arith.constant dense<0.000000e+00> : vector<8x128xf32>
      %22 = tpu.matmul %20, %21, %cst {dimension_numbers = #tpu.dot_dimension_numbers<[1], [0], [0], [1], [0, 0, 1, 1], [], []>} : vector<8x32xbf16>, vector<32x128xbf16>, vector<8x128xf32> -> vector<8x128xf32>
      %c0_12 = arith.constant 0 : index
      %c0_13 = arith.constant 0 : index
      %23 = vector.load %arg14[%c0_12, %c0_13] : memref<1x128xf32, #tpu.memory_space<vmem>>, vector<1x128xf32>
      %24 = vector.broadcast %23 : vector<1x128xf32> to vector<8x128xf32>
      %25 = arith.addf %22, %24 : vector<8x128xf32>
      %c0_14 = arith.constant 0 : index
      %c0_15 = arith.constant 0 : index
      %26 = vector.load %arg15[%c0_14, %c0_15] : memref<32x128xbf16, #tpu.memory_space<vmem>>, vector<32x128xbf16>
      %cst_16 = arith.constant dense<0.000000e+00> : vector<8x128xf32>
      %27 = tpu.matmul %20, %26, %cst_16 {dimension_numbers = #tpu.dot_dimension_numbers<[1], [0], [0], [1], [0, 0, 1, 1], [], []>} : vector<8x32xbf16>, vector<32x128xbf16>, vector<8x128xf32> -> vector<8x128xf32>
      %c0_17 = arith.constant 0 : index
      %c0_18 = arith.constant 0 : index
      %28 = vector.load %arg16[%c0_17, %c0_18] : memref<1x128xf32, #tpu.memory_space<vmem>>, vector<1x128xf32>
      %29 = vector.broadcast %28 : vector<1x128xf32> to vector<8x128xf32>
      %30 = arith.addf %27, %29 : vector<8x128xf32>
      %c0_19 = arith.constant 0 : index
      %c0_20 = arith.constant 0 : index
      %31 = vector.load %arg23[%c0_19, %c0_20] : memref<8x1xf32, #tpu.memory_space<vmem>>, vector<8x1xf32>
      %c0_21 = arith.constant 0 : index
      %c0_22 = arith.constant 0 : index
      %32 = vector.load %arg24[%c0_21, %c0_22] : memref<8x1xf32, #tpu.memory_space<vmem>>, vector<8x1xf32>
      %33 = math.log %32 : vector<8x1xf32>
      %34 = arith.addf %31, %33 : vector<8x1xf32>
      %35 = vector.broadcast %34 : vector<8x1xf32> to vector<8x128xf32>
      %36 = arith.subf %25, %35 : vector<8x128xf32>
      %c0_23 = arith.constant 0 : index
      %c0_24 = arith.constant 0 : index
      %37 = vector.load %arg19[%c0_23, %c0_24] : memref<8x128xf32, #tpu.memory_space<vmem>>, vector<8x128xf32>
      tpu.vector_store %arg19[%c0_23, %c0_24], %36 {strides = array<i32>} : memref<8x128xf32, #tpu.memory_space<vmem>>, vector<8x128xf32>,
      %c0_25 = arith.constant 0 : index
      %c0_26 = arith.constant 0 : index
      %38 = vector.load %arg25[%c0_25, %c0_26] : memref<8x1xf32, #tpu.memory_space<vmem>>, vector<8x1xf32>
      %c0_27 = arith.constant 0 : index
      %c0_28 = arith.constant 0 : index
      %39 = vector.load %arg26[%c0_27, %c0_28] : memref<8x1xf32, #tpu.memory_space<vmem>>, vector<8x1xf32>
      %40 = math.log %39 : vector<8x1xf32>
      %41 = arith.addf %38, %40 : vector<8x1xf32>
      %42 = vector.broadcast %41 : vector<8x1xf32> to vector<8x128xf32>
      %43 = arith.subf %30, %42 : vector<8x128xf32>
      %c0_29 = arith.constant 0 : index
      %c0_30 = arith.constant 0 : index
      %44 = vector.load %arg20[%c0_29, %c0_30] : memref<8x128xf32, #tpu.memory_space<vmem>>, vector<8x128xf32>
      tpu.vector_store %arg20[%c0_29, %c0_30], %43 {strides = array<i32>} : memref<8x128xf32, #tpu.memory_space<vmem>>, vector<8x128xf32>,
    } else {
    }
    return
  }
  func.func @transform_0(%arg0: i32, %arg1: i32, %arg2: i32) -> (i32, i32) {
    %c0_i32 = arith.constant 0 : i32
    %0 = arith.cmpi eq, %arg1, %c0_i32 : i32
    %c1_i32 = arith.constant 1 : i32
    %1 = arith.select %0, %arg2, %c1_i32 : i32
    %c0_i32_0 = arith.constant 0 : i32
    return %arg0, %1 : i32, i32
  }
  func.func @transform_1(%arg0: i32, %arg1: i32, %arg2: i32) -> (i32, i32) {
    %c0_i32 = arith.constant 0 : i32
    %0 = arith.cmpi eq, %arg1, %c0_i32 : i32
    %c1_i32 = arith.constant 1 : i32
    %1 = arith.select %0, %arg2, %c1_i32 : i32
    %c0_i32_0 = arith.constant 0 : i32
    %c0_i32_1 = arith.constant 0 : i32
    return %1, %c0_i32_0 : i32, i32
  }
  func.func @transform_2(%arg0: i32, %arg1: i32, %arg2: i32) -> (i32, i32) {
    %c0_i32 = arith.constant 0 : i32
    %c0_i32_0 = arith.constant 0 : i32
    %c0_i32_1 = arith.constant 0 : i32
    return %c0_i32, %c0_i32_0 : i32, i32
  }
  func.func @transform_3(%arg0: i32, %arg1: i32, %arg2: i32) -> (i32, i32) {
    %c0_i32 = arith.constant 0 : i32
    %c0_i32_0 = arith.constant 0 : i32
    %c0_i32_1 = arith.constant 0 : i32
    return %c0_i32, %c0_i32_0 : i32, i32
  }
  func.func @transform_4(%arg0: i32, %arg1: i32, %arg2: i32) -> (i32, i32) {
    %c0_i32 = arith.constant 0 : i32
    %c0_i32_0 = arith.constant 0 : i32
    %c0_i32_1 = arith.constant 0 : i32
    return %c0_i32, %c0_i32_0 : i32, i32
  }
  func.func @transform_5(%arg0: i32, %arg1: i32, %arg2: i32) -> (i32, i32) {
    %c0_i32 = arith.constant 0 : i32
    %c0_i32_0 = arith.constant 0 : i32
    %c0_i32_1 = arith.constant 0 : i32
    return %c0_i32, %c0_i32_0 : i32, i32
  }
  func.func @transform_6(%arg0: i32, %arg1: i32, %arg2: i32) -> (i32, i32) {
    %c0_i32 = arith.constant 0 : i32
    %c0_i32_0 = arith.constant 0 : i32
    %c0_i32_1 = arith.constant 0 : i32
    return %c0_i32, %c0_i32_0 : i32, i32
  }
  func.func @transform_7(%arg0: i32, %arg1: i32, %arg2: i32) -> (i32, i32) {
    %c0_i32 = arith.constant 0 : i32
    %c0_i32_0 = arith.constant 0 : i32
    %c0_i32_1 = arith.constant 0 : i32
    return %c0_i32, %c0_i32_0 : i32, i32
  }
  func.func @transform_8(%arg0: i32, %arg1: i32, %arg2: i32) -> (i32, i32) {
    %c0_i32 = arith.constant 0 : i32
    %c0_i32_0 = arith.constant 0 : i32
    %c0_i32_1 = arith.constant 0 : i32
    return %c0_i32, %c0_i32_0 : i32, i32
  }
  func.func @transform_9(%arg0: i32, %arg1: i32, %arg2: i32) -> (i32, i32) {
    %c0_i32 = arith.constant 0 : i32
    %c0_i32_0 = arith.constant 0 : i32
    return %arg0, %c0_i32 : i32, i32
  }
  func.func @transform_10(%arg0: i32, %arg1: i32, %arg2: i32) -> (i32, i32) {
    %c0_i32 = arith.constant 0 : i32
    %0 = arith.cmpi eq, %arg1, %c0_i32 : i32
    %c0_i32_0 = arith.constant 0 : i32
    %1 = arith.select %0, %c0_i32_0, %arg2 : i32
    %c0_i32_1 = arith.constant 0 : i32
    %c0_i32_2 = arith.constant 0 : i32
    return %c0_i32_1, %1 : i32, i32
  }
  func.func @transform_11(%arg0: i32, %arg1: i32, %arg2: i32) -> (i32, i32) {
    %c0_i32 = arith.constant 0 : i32
    %0 = arith.cmpi eq, %arg1, %c0_i32 : i32
    %c0_i32_0 = arith.constant 0 : i32
    %1 = arith.select %0, %c0_i32_0, %arg2 : i32
    %c0_i32_1 = arith.constant 0 : i32
    %c0_i32_2 = arith.constant 0 : i32
    return %c0_i32_1, %1 : i32, i32
  }
  func.func @transform_12(%arg0: i32, %arg1: i32, %arg2: i32) -> (i32, i32) {
    %c0_i32 = arith.constant 0 : i32
    %0 = arith.cmpi eq, %arg1, %c0_i32 : i32
    %c0_i32_0 = arith.constant 0 : i32
    %1 = arith.select %0, %c0_i32_0, %arg2 : i32
    %c0_i32_1 = arith.constant 0 : i32
    %c0_i32_2 = arith.constant 0 : i32
    return %c0_i32_1, %1 : i32, i32
  }
  func.func @transform_13(%arg0: i32, %arg1: i32, %arg2: i32) -> (i32, i32) {
    %c0_i32 = arith.constant 0 : i32
    %0 = arith.cmpi eq, %arg1, %c0_i32 : i32
    %c0_i32_0 = arith.constant 0 : i32
    %1 = arith.select %0, %c0_i32_0, %arg2 : i32
    %c0_i32_1 = arith.constant 0 : i32
    %c0_i32_2 = arith.constant 0 : i32
    return %c0_i32_1, %1 : i32, i32
  }
  func.func @transform_14(%arg0: i32, %arg1: i32, %arg2: i32) -> (i32, i32) {
    %c0_i32 = arith.constant 0 : i32
    %c0_i32_0 = arith.constant 0 : i32
    return %arg0, %c0_i32 : i32, i32
  }
  func.func @transform_15(%arg0: i32, %arg1: i32, %arg2: i32) -> (i32, i32) {
    %c0_i32 = arith.constant 0 : i32
    %c0_i32_0 = arith.constant 0 : i32
    return %arg0, %c0_i32 : i32, i32
  }
  func.func @transform_16(%arg0: i32, %arg1: i32, %arg2: i32) -> (i32, i32) {
    %c2_i32 = arith.constant 2 : i32
    %0 = arith.cmpi eq, %arg1, %c2_i32 : i32
    %c0_i32 = arith.constant 0 : i32
    %1 = arith.select %0, %arg2, %c0_i32 : i32
    %c0_i32_0 = arith.constant 0 : i32
    return %arg0, %1 : i32, i32
  }
  func.func @transform_17(%arg0: i32, %arg1: i32, %arg2: i32) -> (i32, i32) {
    %c2_i32 = arith.constant 2 : i32
    %0 = arith.cmpi eq, %arg1, %c2_i32 : i32
    %c0_i32 = arith.constant 0 : i32
    %1 = arith.select %0, %arg2, %c0_i32 : i32
    %c0_i32_0 = arith.constant 0 : i32
    return %arg0, %1 : i32, i32
  }
}

</mosaic_0001>

<bundles_post_ra>
// kernel: nbrreg_forward.1
= control target key start
LH: loop header
LB: loop body
LE: loop exit
PB: predicated region body
PF: predicated region fallthrough
CT: control target
= control target key end

     0   :  { %s3517_s0 = inlined_call_operand.vmem [shape: bf16[16,256], index: 0, kind: input, shape index: {}]   ;;  %s3518_s1 = inlined_call_operand.vmem [shape: bf16[256,128], index: 1, kind: input, shape index: {}]   ;;  %s3519_s2 = inlined_call_operand.hbm [shape: f32[1,128], index: 2, kind: input, shape index: {}]   ;;  %s3520_s3 = inlined_call_operand.hbm [shape: bf16[128,128], index: 3, kind: input, shape index: {}]   ;;  %s3521_s4 = inlined_call_operand.hbm [shape: f32[1,128], index: 4, kind: input, shape index: {}]   ;;  %s3522_s5 = inlined_call_operand.vmem [shape: bf16[128,32], index: 5, kind: input, shape index: {}]   ;;  %s3523_s6 = inlined_call_operand.hbm [shape: f32[1,32], index: 6, kind: input, shape index: {}]   ;;  %s3524_s7 = inlined_call_operand.vmem [shape: bf16[128,32], index: 7, kind: input, shape index: {}]   ;;  %s3525_s8 = inlined_call_operand.vmem [shape: f32[1,32], index: 8, kind: input, shape index: {}]   ;;  %s3526_s9 = inlined_call_operand.vmem [shape: f32[16,32], index: 9, kind: input, shape index: {}]   ;;  %s3527_s10 = inlined_call_operand.vmem [shape: bf16[32,256], index: 10, kind: input, shape index: {}]   ;;  %s3528_s11 = inlined_call_operand.vmem [shape: f32[1,256], index: 11, kind: input, shape index: {}]   ;;  %s3529_s12 = inlined_call_operand.hbm [shape: bf16[32,256], index: 12, kind: input, shape index: {}]   ;;  %s3530_s13 = inlined_call_operand.hbm [shape: f32[1,256], index: 13, kind: input, shape index: {}]   ;;  %s3531_s14 = inlined_call_operand.hbm [shape: f32[16,32], index: 14, kind: output, shape index: {0}]   ;;  %s3532_s15 = inlined_call_operand.hbm [shape: f32[16,32], index: 15, kind: output, shape index: {1}]   ;;  %s3533_s16 = inlined_call_operand.hbm [shape: f32[16,256], index: 16, kind: output, shape index: {2}]   ;;  %s3534_s17 = inlined_call_operand.hbm [shape: f32[16,256], index: 17, kind: output, shape index: {3}]  }
   0x1   :  { %3571 = sst [smem:[#allocation53_spill]] %s3517_s0 }
   0x2   :  { %3572 = sst [smem:[#allocation54_spill]] %s3518_s1 }
   0x3   :  { %3573 = sst [smem:[#allocation55_spill]] %s3519_s2 }
   0x4   :  { %3574 = sst [smem:[#allocation56_spill]] %s3520_s3 }
   0x5   :  { %3575 = sst [smem:[#allocation57_spill]] %s3521_s4 }
   0x6   :  { %3576 = sst [smem:[#allocation58_spill]] %s3522_s5 }
   0x7   :  { %3577 = sst [smem:[#allocation59_spill]] %s3523_s6 }
   0x8   :  { %3578 = sst [smem:[#allocation60_spill]] %s3524_s7 }
   0x9   :  { %3579 = sst [smem:[#allocation61_spill]] %s3525_s8 }
   0xa   :  { %3580 = sst [smem:[#allocation62_spill]] %s3526_s9 }
   0xb   :  { %3581 = sst [smem:[#allocation63_spill]] %s3527_s10 }
   0xc   :  { %3582 = sst [smem:[#allocation64_spill]] %s3528_s11 }
   0xd   :  { %3583 = sst [smem:[#allocation65_spill]] %s3530_s13 }
   0xe   :  { %3584 = sst [smem:[#allocation66_spill]] %s3531_s14 }
   0xf   :  { %3585 = sst [smem:[#allocation67_spill]] %s3532_s15 }
  0x10   :  { %3586 = sst [smem:[#allocation68_spill]] %s3533_s16 }
  0x11   :  { %3587 = sst [smem:[#allocation69_spill]] %s3534_s17 }
  0x12   :  { %23 = vsyncpa [#allocation9], 0 }
  0x13   :  { %24 = vsyncpa [#allocation12], 0 }
  0x14   :  { %25 = vsyncpa [#allocation15], 0 }
  0x15   :  { %26 = vsyncpa [#allocation10], 0 }
  0x16   :  { %28 = vsyncpa [#allocation10 + $0x1], 0 }
  0x17   :  { %29 = vsyncpa [#allocation21], 0 }
  0x18   :  { %31 = vsyncpa [#allocation21 + $0x1], 0 }
  0x19   :  { %32 = vsyncpa [#allocation24], 0 }
  0x1a   :  { %34 = vsyncpa [#allocation24 + $0x1], 0  ;;  %s2980_s24 = smov 0   ;;  %s2982_s25 = smov 0  }
  0x1b   :  { %s2984_s26 = smov 0   ;;  %s2986_s27 = smov 0  }
  0x1c   :  { %s2988_s28 = smov 0   ;;  %s2990_s29 = smov 0  }
  0x1d   :  { %s2992_s0 = smov 0   ;;  %s2994_s30 = smov 0  }
  0x1e   :  { %s2996_s18 = smov 0   ;;  %s2998_s19 = smov 0  }
  0x1f   :  { %s3000_s1 = smov 0   ;;  %s3002_s20 = smov 0  }
  0x20   :  { %s3004_s21 = smov 0   ;;  %s3006_s22 = smov 0  }
  0x21   :  { %s3008_s23 = smov 0   ;;  %s3010_s17 = smov 0  }
  0x22 LB: > { %3588 = sst [smem:[#allocation33_spill]] %s2814_s24  ;;  %s3061_s16 = sadd.s32 4294967295, %s2874_s17   ;;  %s2874_s17 = sphi %s3010_s17, %s40_s17   ;;  %s2870_s23 = sphi %s3008_s23, %s3691_s23   ;;  %s2866_s22 = sphi %s3006_s22, %s3680_s22   ;;  %s2862_s21 = sphi %s3004_s21, %s3679_s21   ;;  %s2858_s20 = sphi %s3002_s20, %s3678_s20   ;;  %s2854_s1 = sphi %s3000_s1, %s3677_s1   ;;  %s2850_s19 = sphi %s2998_s19, %s3690_s19   ;;  %s2846_s18 = sphi %s2996_s18, %s3689_s18   ;;  %s2842_s30 = sphi %s2994_s30, %s3688_s30   ;;  %s2838_s0 = sphi %s2992_s0, %s3674_s0   ;;  %s2834_s29 = sphi %s2990_s29, %s3673_s29   ;;  %s2830_s28 = sphi %s2988_s28, %s3687_s28   ;;  %s2826_s27 = sphi %s2986_s27, %s3686_s27   ;;  %s2822_s26 = sphi %s2984_s26, %s3685_s26   ;;  %s2818_s25 = sphi %s2982_s25, %s3684_s25   ;;  %s2814_s24 = sphi %s2980_s24, %s3682_s24  }
  0x23   : > { %3589 = sst [smem:[#allocation34_spill]] %s2822_s26  ;;  %s52_s15 = sadd.s32 1, %s2862_s21 }
  0x24   : > { %3590 = sst [smem:[#allocation35_spill]] %s2826_s27  ;;  %s55_s8 = sadd.s32 1, %s2866_s22 }
  0x25   : > { %3591 = sst [smem:[#allocation36_spill]] %s2834_s29  ;;  %p53_p0 = scmp.ge.s32.totalorder %s52_s15, 2 }
  0x26   : > { %3592 = sst [smem:[#allocation37_spill]] %s2842_s30  ;;  %s59_s7 = sadd.s32 1, %s2870_s23 }
  0x27   : > { %3593 = sst [smem:[#allocation38_spill]] %s2850_s19  ;;  %p298_p1 = scmp.eq.s32.totalorder %s2866_s22, 0 }
  0x28   : > { %3594 = sst [smem:[#allocation39_spill]] %s2854_s1  ;;  %s305_s5 = sadd.s32 1, %s2846_s18 }
  0x29   : > { %3595 = sst [smem:[#allocation40_spill]] %s2858_s20  ;;  %s3693_s15 = smov (%p53_p0, %s52_s15), 0 }
  0x2a   : > { %3596 = sst [smem:[#allocation41_spill]] %s2862_s21  ;;  %s3695_s8 = smov (!%p53_p0, %s55_s8), %s2866_s22 }
  0x2b   : > { %3597 = sst [smem:[#allocation42_spill]] %s2866_s22  ;;  %p57_p2 = scmp.ge.s32.totalorder %s3695_s8, 3 }
  0x2c   : > { %3598 = sst [smem:[#allocation43_spill]] %s2870_s23  ;;  %p312_p3 = scmp.ne.s32.totalorder %s2846_s18, %s2842_s30 }
  0x2d   : > { %3599 = sst [smem:[#allocation44_spill]] %s3693_s15  ;;  %p313_p4 = scmp.eq.s32.totalorder %s2874_s17, 0 }
  0x2e   : > { %s3073_s11 = scalar_select %p298_p1, 0, %s2862_s21 }
  0x2f   : > { %p378_p5 = scmp.ne.s32.totalorder %s2842_s30, %s2838_s0  ;;  %s3697_s8 = smov (%p57_p2, %s3695_s8), 0 }
  0x30   : > { %3600 = sst [smem:[#allocation45_spill]] %s3697_s8  ;;  %s3699_s7 = smov (!%p57_p2, %s59_s7), %s2870_s23 }
  0x31   : > { %p300_p6 = scmp.eq.s32.totalorder %s3697_s8, 0  ;;  %p3084_p7 = por %p313_p4, %p312_p3 }
  0x32   : > { %p61_p8 = scmp.ge.s32.totalorder %s3699_s7, 2  ;;  %p3552_p9 = scmp.eq.s32.totalorder %s3061_s16, 0 }
  0x33   : > { %s301_s0 = scalar_select %p300_p6, 0, %s3693_s15 }
  0x34   : > { %s3701_s7 = smov (%p61_p8, %s3699_s7), 0  ;;  %p3095_p10 = por %p3552_p9, %p378_p5 }
  0x35   : > { %3602 = sst [smem:[#allocation46_spill]] %s3701_s7  ;;  %s302_s9 = ssub.s32 %s3073_s11, %s301_s0 }
  0x36   : > { %p303_p11 = scmp.eq.s32.totalorder %s302_s9, 0  ;;  %s418_s19 = ssub.s32 %s2870_s23, %s3701_s7 }
  0x37   : > { %p419_p12 = scmp.eq.s32.totalorder %s418_s19, 0  ;;  %s421_s1 = sadd.s32 1, %s2834_s29 }
  0x38   : > { %s3103_s30 = scalar_select %p303_p11, %s2846_s18, %s305_s5  }
  0x39   : > { %s3106_s13 = scalar_select %p419_p12, %s2834_s29, %s421_s1  }
  0x3a   : > { %3604 = sst [smem:[#allocation47_spill]] %s3103_s30  ;;  %p431_p13 = scmp.ne.s32.totalorder %s2834_s29, %s2830_s28 }
  0x3b   : > { %3605 = sst [smem:[#allocation48_spill]] %s3106_s13  ;;  %p432_p0 = scmp.eq.s32.totalorder %s3061_s16, 11 }
  0x3c   : > { %p437_p1 = scmp.ne.s32.totalorder %s2830_s28, %s2826_s27  ;;  %s3606_s0 = sadd.s32 4294967294, %s2874_s17  }
  0x3d   : > { %p3115_p2 = scmp.eq.s32.totalorder %s3606_s0, 11  ;;  %p3121_p3 = por %p432_p0, %p431_p13 }
  0x3e   : > { %p470_p4 = scmp.eq.s32.totalorder %s2866_s22, 2  ;;  %p472_p6 = scmp.eq.s32.totalorder %s3697_s8, 2 }
  0x3f   : > { %p3128_p5 = por %p3115_p2, %p437_p1  ;;  %s479_s23 = sadd.s32 1, %s2822_s26 }
  0x40   : > { %s471_s1 = scalar_select %p470_p4, %s2862_s21, 0 }
  0x41   : > { %s3609_s5 = scalar_select %p3128_p5, 1, 0 }
  0x42   : > { %s473_s0 = scalar_select %p472_p6, %s3693_s15, 0 }
  0x43   : > { %3610 = sst [smem:[#allocation49_spill]] %s3609_s5  ;;  %p489_p8 = scmp.ne.s32.totalorder %s2822_s26, %s2818_s25 }
  0x44   : > { %s475_s30 = ssub.s32 %s471_s1, %s473_s0  ;;  %p495_p11 = scmp.ne.s32.totalorder %s2818_s25, %s2814_s24 }
  0x45   : > { %s476_s13 = sor.u32 %s475_s30, %s418_s19  ;;  %p3142_p12 = por %p489_p8, %p432_p0 }
  0x46   : > { %p477_p13 = scmp.eq.s32.totalorder %s476_s13, 0  ;;  %p3148_p1 = por %p495_p11, %p3115_p2 }
  0x47   : > { %s3611_s29 = scalar_select %p3142_p12, 1, 0 }
  0x48   : > { %s3613_s22 = scalar_select %p3148_p1, 1, 0 }
  0x49   : > { %3612 = sst [smem:[#allocation50_spill]] %s3611_s29  ;;  %p1950_p9 = scmp.ge.s32.totalorder %s2874_s17, 1 }
  0x4a   : > { %3614 = sst [smem:[#allocation51_spill]] %s3613_s22  ;;  %p535_p4 = scmp.lt.s32.totalorder %s2874_s17, 13 }
  0x4b   : > { %s3155_s8 = scalar_select %p477_p13, %s2822_s26, %s479_s23  }
  0x4c   : > { %p3157_p6 = pnand %p1950_p9, %p535_p4  ;;  %s3617_s3 = sld [smem:[#allocation56_spill]] }
  0x4d   : > { %3615 = sst [smem:[#allocation52_spill]] %s3155_s8  ;;  %s2876_s13 = smov [#allocation11]  }
  0x4e   : > { %p2224_p0 = pneg %p3157_p6  ;;  %s560_s9 = sshll.u32 %s2876_s13, 4  ;;  %s561_s9 = int_to_ptr.vmem [resolvable:$true] %s560_s9 }
  0x4f   : > { %p3618_p2 = scmp.eq.s32.totalorder %s3061_s16, 0  ;;  %s2877_s23 = smov 64  }
  0x50   : > { %s2878_s21 = smov 4   ;;  %s3620_s2 = sld [smem:[#allocation55_spill]] }
  0x51   : > { %p3168_p8 = pnand %p2224_p0, %p3618_p2  ;;  %s2879_s13 = smov [#allocation8]  }
  0x52   : > { %s558_s1 = sshll.u32 %s3617_s3, 4  ;;  %s549_s8 = sshll.u32 %s2879_s13, 4  ;;  %s559_s1 = int_to_ptr.hbm [resolvable:$true] %s558_s1  ;;  %s550_s8 = int_to_ptr.vmem [resolvable:$true] %s549_s8 }
  0x53   : > { %2230 = dma.hbm_to_vmem [thread:$0]  (!%p3168_p8), %s559_s1, 1024, %s561_s9, [#allocation12], %s2877_s23, %s2877_s23, %s2878_s21  }
  0x54   : > { %s3621_s4 = sld [smem:[#allocation57_spill]]  ;;  %s2880_s5 = smov [#allocation13]  }
  0x55   : > { %s575_s27 = sshll.u32 %s2880_s5, 4  ;;  %s3622_s6 = sld [smem:[#allocation59_spill]]  ;;  %s576_s27 = int_to_ptr.vmem [resolvable:$true] %s575_s27 }
  0x56   : > { %s547_s3 = sshll.u32 %s3620_s2, 4  ;;  %s2881_s9 = smov [#allocation14]   ;;  %s548_s3 = int_to_ptr.hbm [resolvable:$true] %s547_s3 }
  0x57   : > { %2227 = dma.hbm_to_vmem [thread:$0]  (!%p3168_p8), %s548_s3, 16, %s550_s8, [#allocation9]  }
  0x58   : > { %s590_s23 = sshll.u32 %s2881_s9, 4  ;;  %p1955_p9 = scmp.ge.s32.totalorder %s2874_s17, 12  ;;  %s591_s23 = int_to_ptr.vmem [resolvable:$true] %s590_s23 }
  0x5a   : > { %s573_s22 = sshll.u32 %s3621_s4, 4  ;;  %603 = sbr.rel (%p1955_p9) target bundleno = 125 (0x7d), region = 44  ;;  %s574_s22 = int_to_ptr.hbm [resolvable:$true] %s573_s22 }
  0x5b   : > { %s588_s1 = sshll.u32 %s3622_s6, 4  ;;  %s589_s1 = int_to_ptr.hbm [resolvable:$true] %s588_s1 }
  0x5c   : > { %2233 = dma.hbm_to_vmem [thread:$0]  (!%p3168_p8), %s574_s22, 16, %s576_s27, [#allocation12]  }
  0x5d   : > { %2236 = dma.hbm_to_vmem [thread:$0]  (!%p3168_p8), %s589_s1, 16, %s591_s23, [#allocation15]  }
  0x5f   : > { %641 = sbr.rel (!%p3084_p7) target bundleno = 109 (0x6d), region = 60  ;;  %s643_s3 = sand.u32 (%p3084_p7), 1, %s2846_s18  }
  0x60   : > { %s1957_s8 = sshll.u32 (%p3084_p7), %s3073_s11, 2  ;;  %s1956_s24 = sshll.u32 (%p3084_p7), %s643_s3, 4 }
  0x61   : > { %s3623_s10 = sld [smem:[#allocation63_spill]] (%p3084_p7)  ;;  %s645_s22 = scalar_lea.vmem (%p3084_p7), [#allocation16], %s1956_s24 }
  0x67   : > { %s649_s27 = scalar_lea.vmem %s3623_s10, %s1957_s8 }
  0x68   : > { %v666_v0 = vld [vmem:[%s649_s27] sm:$0xf]  ;;  %v668_v1 = vld [vmem:[%s649_s27 + $0x8] sm:$0xf]  ;;  %v670_v2 = vld [vmem:[%s649_s27 + $0x10] sm:$0xf] }
  0x69   : > { %667 = vst [vmem:[%s645_s22] sm:$0xf] %v666_v0  ;;  %v672_v3 = vld [vmem:[%s649_s27 + $0x18] sm:$0xf] }
  0x6a   : > { %669 = vst [vmem:[%s645_s22 + $0x4] sm:$0xf] %v668_v1 }
  0x6b   : > { %671 = vst [vmem:[%s645_s22 + $0x8] sm:$0xf] %v670_v2 }
  0x6c   : > { %673 = vst [vmem:[%s645_s22 + $0xc] sm:$0xf] %v672_v3 }
  0x6d PF: > { %s716_s5 = sand.u32 1, %s2874_s17   ;;  %s718_s0 = sand.u32 1, %s2846_s18  }
  0x6e   : > { %s1958_s30 = sshll.u32 %s718_s0, 4  ;;  %s1959_s19 = sshll.u32 %s3073_s11, 2 }
  0x6f   : > { %s726_s1 = scalar_lea.hbm %s3529_s12, %s1959_s19  ;;  %s720_s9 = scalar_lea.vmem [#allocation17], %s1958_s30 }
  0x70   : > { %s729_s23 = sshll.u32 %s720_s9, 4  ;;  %s727_s3 = sshll.u32 %s726_s1, 4  ;;  %s730_s23 = int_to_ptr.vmem [resolvable:$true] %s729_s23  ;;  %s728_s3 = int_to_ptr.hbm [resolvable:$true] %s727_s3 }
  0x71   : > { %s717_s8 = scalar_lea.sflag [#allocation9], %s716_s5  ;;  %s2882_s24 = smov 128  }
  0x72   : > { %s2883_s26 = smov 64   ;;  %s2884_s29 = smov 4  }
  0x73   : > { %2204 = dma.hbm_to_vmem [thread:$0]  (%p3084_p7), %s728_s3, 256, %s730_s23, %s717_s8, %s2882_s24, %s2883_s26, %s2884_s29  }
  0x74   : > { %s3624_s2 = sld [smem:[#allocation65_spill]]  ;;  %s742_s10 = scalar_lea.vmem [#allocation18], %s718_s0 }
  0x75   : > { %s751_s13 = sshll.u32 %s742_s10, 4  ;;  %s752_s13 = int_to_ptr.vmem [resolvable:$true] %s751_s13 }
  0x7a   : > { %s747_s4 = scalar_lea.hbm %s3624_s2, %s3073_s11 }
  0x7b   : > { %s749_s6 = sshll.u32 %s747_s4, 4  ;;  %s750_s6 = int_to_ptr.hbm [resolvable:$true] %s749_s6 }
  0x7c   : > { %2205 = dma.hbm_to_vmem [thread:$0]  (%p3084_p7), %s750_s6, 16, %s752_s13, %s717_s8  }
  0x7d PF: > { %760 = sbr.rel (%p3157_p6) target bundleno = 1460 (0x5b4), region = 113  ;;  %p3625_p11 = scmp.eq.s32.totalorder (!%p3157_p6), %s3061_s16, 0 }
  0x82   : > { %2781 = dma.done.wait (%p3625_p11), [#allocation9], 16   ;;  %p3626_p13 = pmov %p3625_p11 }
  0x83   : > { %p3627_p4 = pmov %p3625_p11 }
  0x84   : > { %2783 = vsyncadd (%p3626_p13), [#allocation9], 4294967280 }
  0x85   : > { %2785 = dma.done.wait (%p3627_p4), [#allocation12], 1040   ;;  %p3628_p0 = pmov %p3627_p4 }
  0x87   : > { %2787 = vsyncadd (%p3628_p0), [#allocation12], 4294966256  ;;  %p3629_p2 = pmov %p3628_p0 }
  0x88   : > { %p3630_p7 = pmov %p3628_p0 }
  0x89   : > { %2789 = dma.done.wait (%p3629_p2), [#allocation15], 16  }
  0x8a   : > { %2791 = vsyncadd (%p3630_p7), [#allocation15], 4294967280  ;;  %s3631_s2 = sld [smem:[#allocation37_spill]]  ;;  %s3565_s6 = sand.u32 1, %s3061_s16  }
  0x8b   : > { %s790_s14 = scalar_lea.sflag [#allocation9], %s3565_s6 }
  0x90   : > { %s783_s4 = sand.u32 1, %s3631_s2  }
  0x91   : > { %s1965_s10 = sshll.u32 %s783_s4, 4 }
  0x92   : > { %s3229_s11 = scalar_lea.vmem [#allocation16], %s1965_s10  ;;  %s3233_s15 = scalar_lea.vmem [#allocation17], %s1965_s10 }
  0x93   : > { %2793 = dma.done.wait (%p3095_p10), %s790_s14, 272  }
  0x94   : > { %2795 = vsyncadd (%p3095_p10), %s790_s14, 4294967024  ;;  %s3632_s5 = sld [smem:[#allocation39_spill]]  ;;  %s3564_s19 = sand.u32 1, %s2830_s28  }
  0x95   : > { %s3633_s0 = sld [smem:[#allocation38_spill]]  ;;  %s3242_s21 = sshll.u32 %s3564_s19, 3 }
  0x96   : > { %s3634_s30 = sld [smem:[#allocation40_spill]]  ;;  %s3563_s1 = sand.u32 1, %s2818_s25  }
  0x97   : > { %s3247_s9 = sshll.u32 %s3563_s1, 3  ;;  %s3635_s22 = sld [smem:[#allocation62_spill]] }
  0x98   : > { %s3636_s1 = sld [smem:[#allocation53_spill]]  ;;  %s888_s10 = scalar_lea.vmem [#allocation20], %s3242_s21 }
  0x99   : > { %s3637_s6 = sld [smem:[#allocation54_spill]]  ;;  %s895_s14 = scalar_lea.vmem [#allocation22], %s3247_s9 }
  0x9a   : > { %p903_p10 = scmp.eq.s32.totalorder %s3632_s5, 0  ;;  %s3638_s27 = sld [smem:[#allocation64_spill]] }
  0x9b   : > { %p948_p8 = scmp.eq.s32.totalorder %s3633_s0, 0  ;;  %s3566_s5 = scalar_lea.vmem [#allocation23], %s3247_s9 }
  0x9c   : > { %s904_s20 = scalar_select %p903_p10, %s3633_s0, 1 }
  0x9d   : > { %p905_p6 = scmp.lt.s32.totalorder %s3634_s30, 1  ;;  %p949_p13 = pnand %p948_p8, %p903_p10 }
  0x9e   : > { %p907_p9 = scmp.lt.s32.totalorder %s904_s20, 1  ;;  %s1973_s23 = sshll.u32 %s904_s20, 4 }
  0x9f   : > { %s3703_s30 = smov (!%p905_p6, %s3634_s30), 1  ;;  %p918_p11 = scmp.lt.s32.totalorder %s1973_s23, 31 }
  0xa0   : > { %s3705_s20 = smov (!%p907_p9, %s904_s20), 1  ;;  %s1971_s3 = sshll.u32 %s3703_s30, 1 }
  0xa1   : > { %s910_s8 = sadd.s32 %s1971_s3, %s3705_s20  ;;  %s1975_s24 = sshll.u32 %s3703_s30, 3 }
  0xa2   : > { %s1972_s26 = sshll.u32 %s910_s8, 2  ;;  %s3259_s13 = scalar_lea.vmem %s3635_s22, %s1975_s24 }
  0xa3   : > { %s3264_s19 = scalar_lea.vmem %s3636_s1, %s1972_s26  ;;  %s3707_s23 = smov (!%p918_p11, %s1973_s23), 31 }
  0xa4   : > { %s3709_s0 = smov (%p903_p10, %s3633_s0), 0  ;;  %s1974_s20 = sshll.u32 %s3707_s23, 2 }
  0xa5   : > { %s921_s8 = scalar_lea.vmem %s3637_s6, %s1974_s20  ;;  %p933_p4 = scmp.lt.s32.totalorder %s3709_s0, 1 }
  0xa6   : > { %s3281_s1 = scalar_lea.vmem [#allocation18], %s783_s4  ;;  %s881_s26 = scalar_lea.vmem [#allocation19], %s3242_s21 }
  0xa7   : > { %s3711_s0 = smov (!%p933_p4, %s3709_s0), 1  ;;  %952 = sbr.rel (%p949_p13) target bundleno = 174 (0xae), region = 145 }
  0xa8   : > { %s3277_s22 = scalar_lea.vmem %s3638_s27, %s3711_s0 }
  0xac   : > { %v2885_v4 = vmov 0.0  }
  0xad   : > { %953 = vst [vmem:[#allocation2] sm:$0xff] %v2885_v4 }
  0xae PF: > { %s3639_s23 = sld [smem:[#allocation39_spill]] }
  0xb4   : > { %p1976_p0 = scmp.ne.s32.totalorder %s3639_s23, 0 }
  0xb6   : > { %956 = sbr.rel (%p1976_p0) target bundleno = 353 (0x161), region = 149 }
  0xbb   : > { %v2163_v5 = vld [vmem:[%s921_s8 + $0x38] sm:$0xff]  ;;  %v2162_v6 = vld [vmem:[%s921_s8 + $0x30] sm:$0xff]  ;;  %v2161_v7 = vld [vmem:[%s921_s8 + $0x28] sm:$0xff] }
  0xbc   : > { %1023 = vmatpush.bf16.msra.mxu0 %v2163_v5  ;;  %v2160_v8 = vld [vmem:[%s921_s8 + $0x20] sm:$0xff]  ;;  %v2159_v9 = vld [vmem:[%s921_s8 + $0x18] sm:$0xff]  ;;  %v2158_v10 = vld [vmem:[%s921_s8 + $0x10] sm:$0xff] }
  0xbd   : > { %v2157_v11 = vld [vmem:[%s921_s8 + $0x8] sm:$0xff]  ;;  %v2156_v12 = vld [vmem:[%s921_s8] sm:$0xff] }
  0xbe   : > { %v958_v13 = vld [vmem:[%s3264_s19] sm:$0xf] }
  0xbf   : > { %v957_v14 = vld [vmem:[#allocation2] sm:$0xff] }
  0xc0   : > { %1024 = vmatpush.bf16.msra.mxu0 %v2162_v6 }
  0xc4   : > { %1025 = vmatpush.bf16.msra.mxu0 %v2161_v7 }
  0xc8   : > { %1026 = vmatpush.bf16.msra.mxu0 %v2160_v8 }
  0xcc   : > { %1027 = vmatpush.bf16.msra.mxu0 %v2159_v9 }
  0xd0   : > { %1028 = vmatpush.bf16.msra.mxu0 %v2158_v10 }
  0xd4   : > { %1029 = vmatpush.bf16.msra.mxu0 %v2157_v11 }
  0xd8   : > { %1030 = vmatpush.bf16.msra.mxu0 %v2156_v12 }
  0xdb   : > { %1031 = vmatmul.bf16.vlgmr.msra.gmra.mxu0 %v958_v13 }
 0x158   : > { %v1032_v15 = vpop.f32.mrf.mxu0 }
 0x159   : > { %v1036_v16 = vadd.f32 %v1032_v15, %v957_v14 }
 0x15b   : > { %1037 = vst [vmem:[#allocation2] sm:$0xff] %v1036_v16 }
 0x160   : > { %v1034_v17 = vpop.f32.mrf.mxu0 }
 0x161 PF: > { %s3640_s2 = sld [smem:[#allocation38_spill]] }
 0x167   : > { %p1038_p2 = scmp.eq.s32.totalorder %s3640_s2, 1 }
 0x169   : > { %p1039_p7 = pnand %p1038_p2, %p903_p10 }
 0x16a   : > { %s3642_s20 = sld [smem:[#allocation58_spill]] (!%p1039_p7) }
 0x16b   : > { %1042 = sbr.rel (%p1039_p7) target bundleno = 699 (0x2bb), region = 153  ;;  %s3644_s8 = sld [smem:[#allocation60_spill]] (!%p1039_p7) }
 0x170   : > { %v2171_v18 = vld [vmem:[#allocation11 + $0x38] sm:$0xff]  ;;  %v2170_v19 = vld [vmem:[#allocation11 + $0x30] sm:$0xff]  ;;  %s3643_s3 = smov %s3642_s20  ;;  %v2179_v20 = vld [vmem:[%s3642_s20 + $0x38] sm:$0xff]  ;;  %vm1315_vm0 = vcmask 261120   ;;  %s3645_s20 = sld [smem:[#allocation61_spill]]  ;;  %vm1322_vm1 = vcmask 7168  }
 0x171   : > { %1119 = vmatpush.bf16.msra.mxu0 %v2171_v18  ;;  %v2187_v21 = vld [vmem:[%s3644_s8 + $0x38] sm:$0xff]  ;;  %1202 = vmatpush.bf16.msra.mxu1 %v2179_v20  ;;  %v2178_v22 = vld [vmem:[%s3643_s3 + $0x30] sm:$0xff]  ;;  %v2177_v25 = vld [vmem:[%s3643_s3 + $0x28] sm:$0xff]  ;;  %v2886_v61 = vmov -inf   ;;  %v2887_v62 = vmov 0.0  }
 0x172   : > { %v2169_v23 = vld [vmem:[#allocation11 + $0x28] sm:$0xff]  ;;  %1283 = vmatpush.bf16.msra.mxu2 %v2187_v21  ;;  %v2186_v24 = vld [vmem:[%s3644_s8 + $0x30] sm:$0xff]  ;;  %v2185_v27 = vld [vmem:[%s3644_s8 + $0x28] sm:$0xff]  ;;  %1323 = vst.msk [vmem:[#allocation4] sm:$0xff] %vm1322_vm1, %v2886_v61 }
 0x173   : > { %v2168_v26 = vld [vmem:[#allocation11 + $0x20] sm:$0xff]  ;;  %v2176_v28 = vld [vmem:[%s3643_s3 + $0x20] sm:$0xff]  ;;  %v2167_v29 = vld [vmem:[#allocation11 + $0x18] sm:$0xff]  ;;  %1324 = vst.msk [vmem:[#allocation6] sm:$0xff] %vm1322_vm1, %v2886_v61 }
 0x174   : > { %v2184_v30 = vld [vmem:[%s3644_s8 + $0x20] sm:$0xff]  ;;  %v2401_v31 = vld [vmem:[#allocation8] ss:$0 sm:$0xff]  ;;  %v2175_v32 = vld [vmem:[%s3643_s3 + $0x18] sm:$0xff]  ;;  %1325 = vst.msk [vmem:[#allocation5] sm:$0xff] %vm1322_vm1, %v2887_v62 }
 0x175   : > { %1120 = vmatpush.bf16.msra.mxu0 %v2170_v19  ;;  %1203 = vmatpush.bf16.msra.mxu1 %v2178_v22  ;;  %v2166_v33 = vld [vmem:[#allocation11 + $0x10] sm:$0xff]  ;;  %v2183_v35 = vld [vmem:[%s3644_s8 + $0x18] sm:$0xff]  ;;  %v2174_v37 = vld [vmem:[%s3643_s3 + $0x10] sm:$0xff]  ;;  %1326 = vst.msk [vmem:[#allocation7] sm:$0xff] %vm1322_vm1, %v2887_v62 }
 0x176   : > { %1284 = vmatpush.bf16.msra.mxu2 %v2186_v24  ;;  %v1043_v34 = vld [vmem:[#allocation2] sm:$0xff]  ;;  %v2182_v39 = vld [vmem:[%s3644_s8 + $0x10] sm:$0xff]  ;;  %v2173_v43 = vld [vmem:[%s3643_s3 + $0x8] sm:$0xff] }
 0x177   : > { %v1048_v36 = vadd.f32 %v2401_v31, %v1043_v34  ;;  %v2165_v38 = vld [vmem:[#allocation11 + $0x8] sm:$0xff]  ;;  %v2164_v41 = vld [vmem:[#allocation11] sm:$0xff]  ;;  %v2181_v44 = vld [vmem:[%s3644_s8 + $0x8] sm:$0xff] }
 0x178   : > { %v2172_v45 = vld [vmem:[%s3643_s3] sm:$0xff]  ;;  %v2402_v47 = vld [vmem:[#allocation13] ss:$0 sm:$0xff]  ;;  %v2403_v53 = vld [vmem:[#allocation14] ss:$0 sm:$0xff] }
 0x179   : > { %1121 = vmatpush.bf16.msra.mxu0 %v2169_v23  ;;  %1204 = vmatpush.bf16.msra.mxu1 %v2177_v25  ;;  %v1049_v40 = vmax.f32 %v1048_v36, 0.0  ;;  %v2180_v46 = vld [vmem:[%s3644_s8] sm:$0xff] }
 0x17a   : > { %1285 = vmatpush.bf16.msra.mxu2 %v2185_v27  ;;  %v2404_v56 = vld [vmem:[%s3645_s20] ss:$0 sm:$0xff] }
 0x17b   : > { %v1050_v42 = vpack.c.bf16 %v1049_v40, %v1049_v40  ;;  %v1318_v10 = vld [vmem:[%s3259_s13] sm:$0xff] }
 0x17d   : > { %1122 = vmatpush.bf16.msra.mxu0 %v2168_v26  ;;  %1205 = vmatpush.bf16.msra.mxu1 %v2176_v28 }
 0x17e   : > { %1286 = vmatpush.bf16.msra.mxu2 %v2184_v30 }
 0x181   : > { %1123 = vmatpush.bf16.msra.mxu0 %v2167_v29  ;;  %1206 = vmatpush.bf16.msra.mxu1 %v2175_v32 }
 0x182   : > { %1287 = vmatpush.bf16.msra.mxu2 %v2183_v35 }
 0x185   : > { %1124 = vmatpush.bf16.msra.mxu0 %v2166_v33  ;;  %1207 = vmatpush.bf16.msra.mxu1 %v2174_v37 }
 0x186   : > { %1288 = vmatpush.bf16.msra.mxu2 %v2182_v39 }
 0x189   : > { %1125 = vmatpush.bf16.msra.mxu0 %v2165_v38  ;;  %1208 = vmatpush.bf16.msra.mxu1 %v2173_v43 }
 0x18a   : > { %1289 = vmatpush.bf16.msra.mxu2 %v2181_v44 }
 0x18d   : > { %1126 = vmatpush.bf16.msra.mxu0 %v2164_v41  ;;  %1209 = vmatpush.bf16.msra.mxu1 %v2172_v45 }
 0x18e   : > { %1290 = vmatpush.bf16.msra.mxu2 %v2180_v46 }
 0x190   : > { %1127 = vmatmul.bf16.vlgmr.msra.gmra.mxu0 %v1050_v42 }
 0x20d   : > { %v1128_v48 = vpop.f32.mrf.mxu0 }
 0x20e   : > { %v1129_v49 = vadd.f32 %v2402_v47, %v1128_v48 }
 0x210   : > { %v1132_v50 = vmax.f32 %v1129_v49, 0.0 }
 0x212   : > { %v1133_v51 = vpack.c.bf16 %v1132_v50, %v1132_v50 }
 0x214   : > { %1210 = vmatmul.bf16.vlgmr.msra.gmra.mxu1 %v1133_v51  ;;  %1291 = vmatmul.bf16.vlgmr.msra.gmra.mxu2 %v1133_v51 }
 0x215   : > { %v1130_v52 = vpop.f32.mrf.mxu0 }
 0x291   : > { %v1211_v54 = vpop.f32.mrf.mxu1 }
 0x292   : > { %v1212_v55 = vadd.f32 %v2403_v53, %v1211_v54 }
 0x294   : > { %1316 = vst.msk [vmem:[%s881_s26] sm:$0xff] %vm1315_vm0, %v1212_v55 }
 0x297   : > { %v1292_v57 = vpop.f32.mrf.mxu2 }
 0x298   : > { %v1293_v58 = vadd.f32 %v2404_v56, %v1292_v57 }
 0x299   : > { %v1213_v59 = vpop.f32.mrf.mxu1 }
 0x29a   : > { %v2105_v60 = vmul.f32 -1.442695, %v1293_v58 }
 0x29c   : > { %2405 = vpow2.f32 %v2105_v60 }
 0x29f   : > { %v1294_v63 = vpop.f32.mrf.mxu2 }
 0x2a2   : > { %v2406_v0 = vpop.eup %2405 }
 0x2a3   : > { %v1299_v1 = vadd.f32 1.0, %v2406_v0 }
 0x2a5   : > { %2407 = vrcp.f32 %v1299_v1  ;;  %v1311_v5 = vand.u32 2147483648, %v1299_v1  ;;  %v1309_v7 = vand.u32 2147483647, %v1299_v1  ;;  %vm1305_vm3 = vweird.f32 %v1299_v1 }
 0x2a7   : > { %v1312_v9 = vor.u32 1.1754944e-38, %v1311_v5  ;;  %vm1310_vm5 = vcmp.eq.f32.partialorder %v1309_v7, 8.507059e+37 }
 0x2ab   : > { %v2408_v2 = vpop.eup %2407 }
 0x2ac   : > { %v1301_v3 = vmul.f32 %v2408_v2, %v1299_v1  ;;  %vm1306_vm2 = vweird.f32 %v2408_v2 }
 0x2ad   : > { %vm1307_vm4 = vmor %vm1305_vm3, %vm1306_vm2 }
 0x2ae   : > { %v1302_v4 = vsub.f32 1.0, %v1301_v3 }
 0x2b0   : > { %v1303_v6 = vmul.f32 %v2408_v2, %v1302_v4 }
 0x2b2   : > { %v1304_v8 = vadd.f32 %v2408_v2, %v1303_v6 }
 0x2b4   : > { %v1308_v11 = vsel %vm1307_vm4, %v2408_v2, %v1304_v8 }
 0x2b5   : > { %v1313_v12 = vsel %vm1310_vm5, %v1312_v9, %v1308_v11 }
 0x2b6   : > { %1317 = vst.msk [vmem:[%s888_s10] sm:$0xff] %vm1315_vm0, %v1313_v12  ;;  %v1319_v13 = vmul.f32 %v1318_v10, %v1313_v12 }
 0x2b8   : > { %v1320_v14 = vadd.f32 %v1319_v13, %v1212_v55 }
 0x2ba   : > { %1321 = vst.msk [vmem:[#allocation3] sm:$0xff] %vm1315_vm0, %v1320_v14 }
 0x2bb PF: > { %s3646_s19 = sld [smem:[#allocation39_spill]] }
 0x2c1   : > { %p2106_p10 = scmp.ne.s32.totalorder %s3646_s19, 1 }
 0x2c3   : > { %1330 = sbr.rel (%p2106_p10) target bundleno = 1227 (0x4cb), region = 157 }
 0x2c8   : > { %v2189_v15 = vld [vmem:[%s3229_s11 + $0x8] sm:$0xff]  ;;  %v2188_v17 = vld [vmem:[%s3229_s11] sm:$0xff]  ;;  %vm1353_vm6 = vcmask 261120   ;;  %v2888_v29 = vmov 0   ;;  %vm1443_vm7 = vcmask 7168  }
 0x2c9   : > { %v2191_v16 = vld [vmem:[%s3233_s15 + $0x8] sm:$0xff]  ;;  %1363 = vmatpush.bf16.msra.mxu0 %v2189_v15  ;;  %v2190_v18 = vld [vmem:[%s3233_s15] sm:$0xff]  ;;  %2409 = vset.pattern.permute.xlu1 %v2888_v29 }
 0x2ca   : > { %1396 = vmatpush.bf16.msra.mxu1 %v2191_v16  ;;  %v1331_v19 = vld [vmem:[#allocation3] sm:$0xff]  ;;  %v2411_v21 = vld [vmem:[%s3277_s22] ss:$0 sm:$0xff]  ;;  %2410 = vset.pattern.permute.xlu0 %v2888_v29  ;;  %v1403_v30 = vld [vmem:[#allocation4] sm:$0xff] }
 0x2cb   : > { %v1332_v20 = vpack.c.bf16 %v1331_v19, %v1331_v19  ;;  %v2412_v25 = vld [vmem:[%s3281_s1] ss:$0 sm:$0xff]  ;;  %v1435_v57 = vld [vmem:[#allocation5] sm:$0xff]  ;;  %v1445_v62 = vld [vmem:[#allocation7] sm:$0xff] }
 0x2cc   : > { %v1407_v34 = vld [vmem:[#allocation6] sm:$0xff] }
 0x2cd   : > { %1364 = vmatpush.bf16.msra.mxu0 %v2188_v17 }
 0x2ce   : > { %1397 = vmatpush.bf16.msra.mxu1 %v2190_v18 }
 0x2d0   : > { %2115 = vmatmul.msk.bf16.vlgmr.msra.gmra.mxu0 %vm1353_vm6, %v1332_v20 }
 0x2d1   : > { %2124 = vmatmul.msk.bf16.vlgmr.msra.gmra.mxu1 %vm1353_vm6, %v1332_v20 }
 0x34d   : > { %v1366_v22 = vpop.f32.mrf.mxu0 }
 0x34e   : > { %v1399_v23 = vpop.f32.mrf.mxu1  ;;  %v1367_v24 = vadd.f32 %v2411_v21, %v1366_v22 }
 0x34f   : > { %v1400_v26 = vadd.f32 %v2412_v25, %v1399_v23 }
 0x350   : > { %1404 = vmax.xlane.f32.xlu0 %v1367_v24 }
 0x355   : > { %v1368_v27 = vpop.f32.mrf.mxu0 }
 0x356   : > { %v1401_v28 = vpop.f32.mrf.mxu1 }
 0x358   : > { %1408 = vmax.xlane.f32.xlu0 %v1400_v26 }
 0x3c3   : > { %v1405_v31 = vpop.xlane.xlu0 %1404 }
 0x3c4   : > { %v1406_v32 = vmax.f32 %v1403_v30, %v1405_v31 }
 0x3c6   : > { %v1436_v33 = vsub.f32 %v1403_v30, %v1406_v32  ;;  %1455 = vst.msk [vmem:[#allocation4] sm:$0xff] %vm1443_vm7, %v1406_v32  ;;  %1413 = vperm.xlu1 %2409, %v1406_v32  }
 0x3c8   : > { %v1437_v54 = vmul.f32 1.442695, %v1436_v33 }
 0x3cb   : > { %v1409_v35 = vpop.xlane.xlu0 %1408 }
 0x3cc   : > { %v1410_v36 = vmax.f32 %v1407_v34, %v1409_v35 }
 0x3ce   : > { %v1447_v37 = vsub.f32 %v1407_v34, %v1410_v36  ;;  %1456 = vst.msk [vmem:[#allocation6] sm:$0xff] %vm1443_vm7, %v1410_v36  ;;  %1425 = vperm.xlu1 %2409, %v1410_v36  }
 0x3d0   : > { %v1448_v55 = vmul.f32 1.442695, %v1447_v37 }
 0x438   : > { %v1414_v38 = vpop.permute.xlu1 %1413 }
 0x439   : > { %v1416_v39 = vsub.f32 %v1367_v24, %v1414_v38 }
 0x43b   : > { %v1417_v40 = vpack.c.bf16 %v1416_v39, %v1416_v39 }
 0x43d   : > { %v1418_v41 = vunpack.c.l.bf16 %v1417_v40 }
 0x43f   : > { %v1419_v42 = vmul.f32 1.442695, %v1418_v41 }
 0x440   : > { %v1426_v43 = vpop.permute.xlu1 %1425 }
 0x441   : > { %v1428_v44 = vsub.f32 %v1400_v26, %v1426_v43  ;;  %2413 = vpow2.f32 %v1419_v42 }
 0x443   : > { %v1429_v45 = vpack.c.bf16 %v1428_v44, %v1428_v44 }
 0x445   : > { %v1430_v46 = vunpack.c.l.bf16 %v1429_v45 }
 0x447   : > { %v2414_v47 = vpop.eup %2413  ;;  %v1431_v48 = vmul.f32 1.442695, %v1430_v46 }
 0x448   : > { %v1421_v49 = vpack.c.bf16 %v2414_v47, %v2414_v47 }
 0x449   : > { %2415 = vpow2.f32 %v1431_v48 }
 0x44a   : > { %v1422_v50 = vunpack.c.l.bf16 %v1421_v49  ;;  %2417 = vpow2.f32 %v1437_v54 }
 0x44b   : > { %2419 = vpow2.f32 %v1448_v55 }
 0x44c   : > { %1440 = vadd.xlane.f32.xlu2 %v1422_v50 }
 0x44f   : > { %v2416_v51 = vpop.eup %2415 }
 0x450   : > { %v1433_v52 = vpack.c.bf16 %v2416_v51, %v2416_v51  ;;  %v2418_v56 = vpop.eup %2417 }
 0x451   : > { %v1439_v58 = vmul.f32 %v2418_v56, %v1435_v57  ;;  %v2420_v61 = vpop.eup %2419 }
 0x452   : > { %v1434_v53 = vunpack.c.l.bf16 %v1433_v52  ;;  %v1450_v63 = vmul.f32 %v2420_v61, %v1445_v62 }
 0x454   : > { %1451 = vadd.xlane.f32.xlu2 %v1434_v53 }
 0x4bf   : > { %v1441_v59 = vpop.xlane.xlu2 %1440 }
 0x4c0   : > { %v1442_v60 = vadd.f32 %v1441_v59, %v1439_v58 }
 0x4c2   : > { %1444 = vst.msk [vmem:[#allocation5] sm:$0xff] %vm1443_vm7, %v1442_v60 }
 0x4c7   : > { %v1452_v0 = vpop.xlane.xlu2 %1451 }
 0x4c8   : > { %v1453_v1 = vadd.f32 %v1452_v0, %v1450_v63 }
 0x4ca   : > { %1454 = vst.msk [vmem:[#allocation7] sm:$0xff] %vm1443_vm7, %v1453_v1 }
 0x4cb PF: > { %s3647_s13 = sld [smem:[#allocation39_spill]] }
 0x4d1   : > { %p2125_p6 = scmp.ne.s32.totalorder %s3647_s13, 2 }
 0x4d3   : > { %1460 = sbr.rel (%p2125_p6) target bundleno = 1383 (0x567), region = 161 }
 0x4d8   : > { %v2193_v2 = vld [vmem:[%s3229_s11 + $0x8] sm:$0xff]  ;;  %v2192_v4 = vld [vmem:[%s3229_s11] sm:$0xff]  ;;  %v2889_v6 = vmov 0   ;;  %vm1483_vm8 = vcmask 261120  }
 0x4d9   : > { %v2195_v3 = vld [vmem:[%s3233_s15 + $0x8] sm:$0xff]  ;;  %v2194_v5 = vld [vmem:[%s3233_s15] sm:$0xff]  ;;  %2421 = vset.pattern.permute.xlu0 %v2889_v6  ;;  %1493 = vmatpush.bf16.msra.mxu0 %v2193_v2 }
 0x4da   : > { %1526 = vmatpush.bf16.msra.mxu1 %v2195_v3  ;;  %v1461_v7 = vld [vmem:[#allocation3] sm:$0xff]  ;;  %v1534_v8 = vld [vmem:[#allocation5] sm:$0xff]  ;;  %v1533_v12 = vld [vmem:[#allocation4] sm:$0xff] }
 0x4db   : > { %v1546_v9 = vld [vmem:[#allocation7] sm:$0xff]  ;;  %2424 = vlog2.f32 %v1534_v8  ;;  %v1462_v10 = vpack.c.bf16 %v1461_v7, %v1461_v7  ;;  %v1545_v17 = vld [vmem:[#allocation6] sm:$0xff] }
 0x4dc   : > { %2426 = vlog2.f32 %v1546_v9  ;;  %v2422_v20 = vld [vmem:[%s3277_s22] ss:$0 sm:$0xff] }
 0x4dd   : > { %1494 = vmatpush.bf16.msra.mxu0 %v2192_v4  ;;  %v2423_v21 = vld [vmem:[%s3281_s1] ss:$0 sm:$0xff] }
 0x4de   : > { %1527 = vmatpush.bf16.msra.mxu1 %v2194_v5 }
 0x4e0   : > { %2134 = vmatmul.msk.bf16.vlgmr.msra.gmra.mxu0 %vm1483_vm8, %v1462_v10 }
 0x4e1   : > { %v2425_v11 = vpop.eup %2424  ;;  %2143 = vmatmul.msk.bf16.vlgmr.msra.gmra.mxu1 %vm1483_vm8, %v1462_v10 }
 0x4e2   : > { %v1536_v13 = vmul.f32 0.6931472, %v2425_v11  ;;  %v2427_v14 = vpop.eup %2426 }
 0x4e3   : > { %v1548_v16 = vmul.f32 0.6931472, %v2427_v14 }
 0x4e4   : > { %v1537_v15 = vadd.f32 %v1536_v13, %v1533_v12 }
 0x4e5   : > { %v1549_v18 = vadd.f32 %v1548_v16, %v1545_v17 }
 0x4e6   : > { %1540 = vperm.xlu0 %2421, %v1537_v15  }
 0x4ee   : > { %1552 = vperm.xlu0 %2421, %v1549_v18  }
 0x558   : > { %v1541_v19 = vpop.permute.xlu0 %1540 }
 0x55d   : > { %v1496_v22 = vpop.f32.mrf.mxu0 }
 0x55e   : > { %v1529_v23 = vpop.f32.mrf.mxu1  ;;  %v1497_v24 = vadd.f32 %v2422_v20, %v1496_v22 }
 0x55f   : > { %v1530_v25 = vadd.f32 %v2423_v21, %v1529_v23 }
 0x560   : > { %v1553_v26 = vpop.permute.xlu0 %1552  ;;  %v1543_v27 = vsub.f32 %v1497_v24, %v1541_v19 }
 0x561   : > { %v1555_v28 = vsub.f32 %v1530_v25, %v1553_v26 }
 0x562   : > { %1544 = vst [vmem:[%s895_s14] sm:$0xff] %v1543_v27 }
 0x563   : > { %1556 = vst [vmem:[%s3566_s5] sm:$0xff] %v1555_v28 }
 0x565   : > { %v1498_v29 = vpop.f32.mrf.mxu0 }
 0x566   : > { %v1531_v30 = vpop.f32.mrf.mxu1 }
 0x567 PF: > { %s3648_s11 = sld [smem:[#allocation40_spill]]  ;;  %s1599_s24 = sshll.u32 %s888_s10, 4  ;;  %s1600_s24 = int_to_ptr.vmem [resolvable:$true] %s1599_s24 }
 0x568   : > { %s3649_s30 = sld [smem:[#allocation67_spill]]  ;;  %s3651_s23 = sand.u32 1, %s3061_s16  }
 0x569   : > { %s3381_s4 = scalar_lea.sflag [#allocation21], %s3651_s23 }
 0x56d   : > { %s2148_s15 = sshll.u32 %s3648_s11, 3 }
 0x56e   : > { %s3650_s2 = smov %s3649_s30  ;;  %s1597_s29 = scalar_lea.hbm %s3649_s30, %s2148_s15 }
 0x56f   : > { %s1601_s27 = sshll.u32 %s1597_s29, 4  ;;  %s2624_s13 = scalar_lea.hbm %s3650_s2, 16  ;;  %s1602_s27 = int_to_ptr.hbm [resolvable:$true] %s1601_s27 }
 0x570   : > { %s2618_s6 = sshra.s32 %s1602_s27, 4  ;;  %s2619_s6 = int_to_ptr.hbm [resolvable:$true] %s2618_s6 }
 0x571   : > { %s2620_s0 = scalar_lea.hbm %s2619_s6, 8  ;;  %p2625_p13 = scmp.lt.s32.totalorder %s2619_s6, %s3650_s2 }
 0x572   : > { %p2621_p8 = scmp.ne.s32.totalorder %s2619_s6, %s2620_s0  ;;  %p2626_p4 = scmp.lt.s32.totalorder %s2624_s13, %s2620_s0 }
 0x574   : > { %p2622_p9 = pnand %p2621_p8, %p3121_p3  ;;  %p2627_p0 = por %p2626_p4, %p2625_p13 }
 0x576   : > { %p2623_p11 = pneg %p2622_p9 }
 0x578   : > { %p2628_p2 = pnand %p2627_p0, %p2623_p11 }
 0x57a   : > { %2631 = shalt.err (!%p2628_p2)
}
 0x57b   : > { %s3652_s16 = sld [smem:[#allocation39_spill]]  ;;  %s1585_s20 = sshll.u32 %s881_s26, 4  ;;  %s1586_s20 = int_to_ptr.vmem [resolvable:$true] %s1585_s20 }
 0x57c   : > { %2217 = dma.vmem_to_hbm [thread:$0]  (%p3121_p3), %s1600_s24, 128, %s1602_s27, %s3381_s4  }
 0x57d   : > { %s3653_s29 = sld [smem:[#allocation66_spill]]  ;;  %s3655_s0 = sand.u32 1, %s2830_s28  }
 0x57e   : > { %s1558_s19 = scalar_lea.sflag [#allocation10], %s3655_s0 }
 0x581   : > { %p1608_p7 = scmp.eq.s32.totalorder %s3652_s16, 2 }
 0x583   : > { %s3654_s5 = smov %s3653_s29  ;;  %s1583_s23 = scalar_lea.hbm %s3653_s29, %s2148_s15 }
 0x584   : > { %s1587_s6 = sshll.u32 %s1583_s23, 4  ;;  %s2652_s1 = scalar_lea.hbm %s3654_s5, 16  ;;  %s1588_s6 = int_to_ptr.hbm [resolvable:$true] %s1587_s6 }
 0x585   : > { %s2646_s13 = sshra.s32 %s1588_s6, 4  ;;  %s2647_s13 = int_to_ptr.hbm [resolvable:$true] %s2646_s13 }
 0x586   : > { %s2648_s22 = scalar_lea.hbm %s2647_s13, 8  ;;  %p2653_p9 = scmp.lt.s32.totalorder %s2647_s13, %s3654_s5 }
 0x587   : > { %p2649_p10 = scmp.ne.s32.totalorder %s2647_s13, %s2648_s22  ;;  %p2654_p11 = scmp.lt.s32.totalorder %s2652_s1, %s2648_s22 }
 0x589   : > { %p2650_p6 = pnand %p2649_p10, %p3121_p3  ;;  %p2655_p13 = por %p2654_p11, %p2653_p9 }
 0x58b   : > { %p2651_p8 = pneg %p2650_p6 }
 0x58d   : > { %p2656_p4 = pnand %p2655_p13, %p2651_p8 }
 0x58f   : > { %2659 = shalt.err (!%p2656_p4)
}
 0x590   : > { %s3656_s26 = sld [smem:[#allocation38_spill]]  ;;  %s2150_s30 = sshll.u32 %s3648_s11, 1 }
 0x591   : > { %2216 = dma.vmem_to_hbm [thread:$0]  (%p3121_p3), %s1586_s20, 128, %s1588_s6, %s1558_s19  }
 0x592   : > { %s1617_s29 = sshll.u32 %s895_s14, 4  ;;  %s3658_s24 = sld [smem:[#allocation68_spill]]  ;;  %s1618_s29 = int_to_ptr.vmem [resolvable:$true] %s1617_s29 }
 0x593   : > { %s3660_s21 = sld [smem:[#allocation69_spill]]  ;;  %s3662_s8 = scalar_lea.vmem [#allocation23], %s3247_s9 }
 0x594   : > { %s3426_s20 = sshll.u32 %s3662_s8, 4  ;;  %s1636_s20 = int_to_ptr.vmem [resolvable:$true] %s3426_s20 }
 0x596   : > { %s3713_s26 = smov (!%p1608_p7, %s3656_s26), 0 }
 0x597   : > { %s1613_s23 = sadd.s32 %s2150_s30, %s3713_s26 }
 0x598   : > { %s2151_s0 = sshll.u32 %s1613_s23, 3  ;;  %s3659_s15 = smov %s3658_s24 }
 0x599   : > { %s1615_s27 = scalar_lea.hbm %s3658_s24, %s2151_s0  ;;  %s3661_s2 = smov %s3660_s21 }
 0x59a   : > { %s1633_s3 = scalar_lea.hbm %s3660_s21, %s2151_s0  ;;  %s1619_s5 = sshll.u32 %s1615_s27, 4  ;;  %s1620_s5 = int_to_ptr.hbm [resolvable:$true] %s1619_s5 }
 0x59b   : > { %s2674_s11 = sshra.s32 %s1620_s5, 4  ;;  %s2680_s19 = scalar_lea.hbm %s3659_s15, 32  ;;  %s2675_s11 = int_to_ptr.hbm [resolvable:$true] %s2674_s11 }
 0x59c   : > { %s2676_s14 = scalar_lea.hbm %s2675_s11, 8  ;;  %p2681_p7 = scmp.lt.s32.totalorder %s2675_s11, %s3659_s15 }
 0x59d   : > { %p2677_p3 = scmp.ne.s32.totalorder %s2675_s11, %s2676_s14  ;;  %p2682_p10 = scmp.lt.s32.totalorder %s2680_s19, %s2676_s14 }
 0x59f   : > { %p2678_p0 = pnand %p2677_p3, %p3142_p12  ;;  %p2683_p6 = por %p2682_p10, %p2681_p7 }
 0x5a1   : > { %p2679_p2 = pneg %p2678_p0 }
 0x5a3   : > { %p2684_p8 = pnand %p2683_p6, %p2679_p2 }
 0x5a5   : > { %2687 = shalt.err (!%p2684_p8)
}
 0x5a6   : > { %2218 = dma.vmem_to_hbm [thread:$0]  (%p3142_p12), %s1618_s29, 128, %s1620_s5, %s3381_s4  }
 0x5a7   : > { %s1637_s9 = sshll.u32 %s1633_s3, 4  ;;  %s3663_s8 = sand.u32 1, %s2818_s25   ;;  %s1638_s9 = int_to_ptr.hbm [resolvable:$true] %s1637_s9 }
 0x5a8   : > { %s1573_s23 = scalar_lea.sflag [#allocation24], %s3663_s8  ;;  %s2702_s0 = sshra.s32 %s1638_s9, 4  ;;  %s2703_s0 = int_to_ptr.hbm [resolvable:$true] %s2702_s0 }
 0x5a9   : > { %s2704_s13 = scalar_lea.hbm %s2703_s0, 8  ;;  %s2708_s27 = scalar_lea.hbm %s3661_s2, 32 }
 0x5aa   : > { %p2705_p9 = scmp.ne.s32.totalorder %s2703_s0, %s2704_s13  ;;  %p2709_p4 = scmp.lt.s32.totalorder %s2703_s0, %s3661_s2 }
 0x5ab   : > { %p2710_p3 = scmp.lt.s32.totalorder %s2708_s27, %s2704_s13 }
 0x5ac   : > { %p2706_p11 = pnand %p2705_p9, %p3142_p12 }
 0x5ad   : > { %p2711_p0 = por %p2710_p3, %p2709_p4 }
 0x5ae   : > { %p2707_p13 = pneg %p2706_p11 }
 0x5b0   : > { %p2712_p2 = pnand %p2711_p0, %p2707_p13 }
 0x5b2   : > { %2715 = shalt.err (!%p2712_p2)
}
 0x5b3   : > { %2219 = dma.vmem_to_hbm [thread:$0]  (%p3142_p12), %s1636_s20, 128, %s1638_s9, %s1573_s23  }
 0x5b4 PF: > { %s3664_s5 = sld [smem:[#allocation35_spill]]  ;;  %p2258_p7 = scmp.ge.s32.totalorder %s2874_s17, 2 }
 0x5b6   : > { %p2238_p10 = pnand %p2258_p7, %p3128_p5 }
 0x5b8   : > { %p2239_p6 = pneg %p2238_p10 }
 0x5ba   : > { %s1649_s4 = sand.u32 1, %s3664_s5  }
 0x5bb   : > { %s1650_s29 = scalar_lea.sflag [#allocation10], %s1649_s4 }
 0x5bc   : > { %2797 = dma.done.wait (%p2239_p6), %s1650_s29, 128  }
 0x5bd   : > { %2799 = vsyncadd (%p2239_p6), %s1650_s29, 4294967168  ;;  %s3666_s21 = sadd.s32 4294967294, %s2874_s17  }
 0x5be   : > { %s1659_s11 = sand.u32 1, %s3666_s21  }
 0x5bf   : > { %s1660_s14 = scalar_lea.sflag [#allocation21], %s1659_s11 }
 0x5c0   : > { %2801 = dma.done.wait (%p2239_p6), %s1660_s14, 128  }
 0x5c1   : > { %2803 = vsyncadd (%p2239_p6), %s1660_s14, 4294967168  ;;  %p2244_p12 = pnand %p2258_p7, %p3148_p1 }
 0x5c3   : > { %p2245_p8 = pneg %p2244_p12 }
 0x5c5   : > { %2805 = dma.done.wait (%p2245_p8), %s1660_s14, 128  }
 0x5c6   : > { %2807 = vsyncadd (%p2245_p8), %s1660_s14, 4294967168  ;;  %s3668_s20 = sld [smem:[#allocation33_spill]] }
 0x5cc   : > { %s1679_s16 = sand.u32 1, %s3668_s20  }
 0x5cd   : > { %s1680_s6 = scalar_lea.sflag [#allocation24], %s1679_s16 }
 0x5ce   : > { %2809 = dma.done.wait (%p2245_p8), %s1680_s6, 128  }
 0x5cf   : > { %2811 = vsyncadd (%p2245_p8), %s1680_s6, 4294967168  ;;  %s40_s17 = sadd.s32 1, %s2874_s17   ;;  %s3670_s26 = sld [smem:[#allocation34_spill]] }
 0x5d0   : > { %p3464_p5 = scmp.ge.s32.totalorder %s40_s17, 14   ;;  %s3671_s30 = sld [smem:[#allocation52_spill]] }
 0x5d1   : > { %s3672_s9 = sld [smem:[#allocation36_spill]]  ;;  %s3682_s24 = smov %s2818_s25 }
 0x5d2   : > { %s3673_s29 = sld [smem:[#allocation48_spill]]  ;;  %s3686_s27 = smov %s2830_s28 }
 0x5d3   : > { %s3674_s0 = sld [smem:[#allocation37_spill]] }
 0x5d4   : > { %s3675_s8 = sld [smem:[#allocation47_spill]] }
 0x5d5   : > { %s3676_s23 = sld [smem:[#allocation41_spill]]  ;;  %s3684_s25 = smov %s3670_s26 }
 0x5d6   : > { %s3677_s1 = sld [smem:[#allocation42_spill]]  ;;  %s3685_s26 = smov %s3671_s30 }
 0x5d7   : > { %s3678_s20 = sld [smem:[#allocation43_spill]]  ;;  %s3687_s28 = smov %s3672_s9 }
 0x5d8   : > { %s3679_s21 = sld [smem:[#allocation44_spill]]  ;;  %s3688_s30 = smov %s2846_s18 }
 0x5d9   : > { %s3680_s22 = sld [smem:[#allocation45_spill]] }
 0x5da   : > { %s3681_s13 = sld [smem:[#allocation46_spill]]  ;;  %s3689_s18 = smov %s3675_s8 }
 0x5db   : > { %s3690_s19 = smov %s3676_s23 }
 0x5dc   :  { %39 = sbr.rel (!%p3464_p5) target bundleno = 34 (0x22), region = 277 }
 0x5e0   : > { %s3691_s23 = smov %s3681_s13 }
 0x5e1   :  { %1686 = vsyncpa [#allocation9], 1 }
 0x5e2   :  { %1688 = vsyncpa [#allocation9 + $0x1], 1 }
 0x5e3   :  { %1689 = vsyncpa [#allocation12], 1 }
 0x5e4   :  { %1690 = vsyncpa [#allocation15], 1 }
 0x5e5   :  { %1691 = vsyncpa [#allocation10], 1 }
 0x5e6   :  { %1693 = vsyncpa [#allocation10 + $0x1], 1 }
 0x5e7   :  { %1694 = vsyncpa [#allocation21], 1 }
 0x5e8   :  { %1696 = vsyncpa [#allocation21 + $0x1], 1 }
 0x5e9   :  { %1697 = vsyncpa [#allocation24], 1 }
 0x5ea   :  { %1699 = vsyncpa [#allocation24 + $0x1], 1 }

</bundles_post_ra>
